<compile_context>
chip_gen: v7x
topology: tpu7x:2x2x1
jax: 0.10.0
libtpu: 0.0.40
codegen_flags: <defaults>
</compile_context>

<pallas_src>
import jax
import jax.numpy as jnp
from jax import lax
from jax.experimental import pallas as pl
from jax.experimental.pallas import tpu as pltpu


# ------------------------------ fused kernel ---------------------------------


def _make_block_kernel(n_stages, relu_flags, cin_per_stage, cin_skip, width):
    """Fused Block kernel on the lane-packed (C, L = nb*H*W) layout.

    Refs: x(Cp,L),
          dw(n_stages*9, Cp, L)  pre-folded mask*weight depthwise tap planes,
          pww(n_stages+1, Cp, Cp) BN-folded 1x1 weights (stages..., skip),
          pwb(Cp, n_stages)       folded biases (last column also holds the skip bias),
          out(Cp, L).
    """

    def kernel(x_ref, dw_ref, pww_ref, pwb_ref, o_ref):
        x0 = x_ref[...]                                # (Cp, L)
        lanes = x0.shape[1]

        def dwconv(a, si):
            """3x3 depthwise conv, pad=1, stride 1 (stride deferred to the wrapper).
            Each tap: roll (XLU) + one FMA with the pre-folded mask*weight plane."""
            acc = None
            t = 0
            for dh in (-1, 0, 1):
                for dx in (-1, 0, 1):
                    shift = dh * width + dx
                    rolled = a if shift == 0 else pltpu.roll(a, (-shift) % lanes, axis=1)
                    term = rolled * dw_ref[si * 9 + t]
                    acc = term if acc is None else acc + term
                    t += 1
            return acc

        def pwconv(a, wmat, n_in):
            """1x1 conv as unrolled per-input-channel broadcast FMAs on the VPU.
            Only the real input channels are visited (padded columns are zero)."""
            acc = wmat[:, 0:1] * a[0:1, :]
            for c in range(1, n_in):
                acc = acc + wmat[:, c:c + 1] * a[c:c + 1, :]
            return acc

        h = x0
        for si in range(n_stages):
            if relu_flags[si]:
                h = jnp.maximum(h, 0.0)
            d = dwconv(h, si)
            h = pwconv(d, pww_ref[si], cin_per_stage[si])
            if si < n_stages - 1:                      # last-stage bias folded below
                h = h + pwb_ref[:, si:si + 1]
        # skip 1x1 conv + residual add; last bias column = b_last_stage + b_skip.
        skip = pwconv(x0, pww_ref[n_stages], cin_skip)
        o_ref[...] = h + skip + pwb_ref[:, n_stages - 1:n_stages]

    return kernel


# ------------------------------ wrapper ---------------------------------------


def _dw_masks(height, width):
    """(9, H*W) validity masks for the 9 taps of a 3x3 conv with zero padding 1."""
    hi = jnp.arange(height)
    wi = jnp.arange(width)
    rows = []
    for dh in (-1, 0, 1):
        for dx in (-1, 0, 1):
            vh = (hi + dh >= 0) & (hi + dh < height)
            vw = (wi + dx >= 0) & (wi + dx < width)
            rows.append((vh[:, None] & vw[None, :]).reshape(-1))
    return jnp.stack(rows).astype(jnp.float32)


def _images_per_step(n):
    """Multi-TC chips (v4/v5p/v7x): one grid step per TensorCore (nb = ceil(n/2)).
    Single-TC chips (v5e/v6e): pack the whole small batch in one step, cap at 8."""
    try:
        kind = jax.devices()[0].device_kind.lower()
    except Exception:
        kind = ""
    multi_tc = any(tag in kind for tag in ("v7", "v5p", "v4"))
    if multi_tc and n > 1:
        return -(-n // 2)
    return min(n, 8)


def block_forward(x_nchw, params):
    """Forward pass of `Block`.  Input/output in NCHW (PyTorch convention)."""
    n, cin, height, width = x_nchw.shape
    s = height * width
    stride = params["skip_stride"]
    stages = params["stages"]
    n_stages = len(stages)
    cout = params["w_skip"].shape[1]

    # Deferring the spatial stride to a wrapper-side slice is exact because the only
    # strided ops are the skip 1x1 conv and the last rep's 3x3/pad-1 depthwise conv.
    assert all(st["stride"] == 1 for st in stages[:-1]), "only the last rep may stride"
    assert stages[-1]["stride"] in (1, stride)

    cp = max([cin, cout] + [st["w_pw"].shape[1] for st in stages])  # common channel pad

    nb = _images_per_step(n)                    # images lane-packed per grid step
    n_pad = -(-n // nb) * nb                    # pad batch: no image is ever dropped
    lanes = nb * s

    # ---- input: NCHW -> (Cp, n_pad*S); channels on sublanes, batch*spatial on lanes.
    x = x_nchw.astype(jnp.float32)
    if cp > cin:
        x = jnp.concatenate(
            [x, jnp.zeros((n, cp - cin, height, width), jnp.float32)], axis=1)
    if n_pad > n:
        x = jnp.concatenate(
            [x, jnp.zeros((n_pad - n, cp, height, width), jnp.float32)], axis=0)
    x_packed = jnp.transpose(x.reshape(n_pad, cp, s), (1, 0, 2)).reshape(cp, n_pad * s)

    # ---- fold eval-mode BatchNorms + boundary masks into 3 packed parameter slabs.
    masks = jnp.tile(_dw_masks(height, width), (1, nb))            # (9, lanes)
    dw_slabs, pw_ws, pw_bs = [], [], []
    cin_per_stage, relu_flags = [], []
    for st in stages:
        ci = st["w_dw"].shape[-1]
        co = st["w_pw"].shape[1]
        wdw = jnp.transpose(st["w_dw"], (2, 0, 1)).reshape(ci, 9) * st["s_dw"][:, None]
        wdw = jnp.pad(wdw, ((0, cp - ci), (0, 0)))                 # (cp, 9)
        dw_slabs.append(masks[:, None, :] * wdw.T[:, :, None])     # (9, cp, lanes)
        wpw = st["w_pw"].T * st["s_pw"][:, None]                   # (co, ci) scale folded
        b_eff = st["b_pw"] + wpw @ st["b_dw"]                      # dw-BN bias folded thru
        pw_ws.append(jnp.pad(wpw, ((0, cp - co), (0, cp - ci))))
        pw_bs.append(jnp.pad(b_eff, (0, cp - co)))
        cin_per_stage.append(ci)
        relu_flags.append(bool(st["relu"]))
    wskip = params["w_skip"].T * params["s_skip"][:, None]
    pw_ws.append(jnp.pad(wskip, ((0, cp - cout), (0, cp - cin))))
    pw_bs[-1] = pw_bs[-1] + jnp.pad(params["b_skip"], (0, cp - cout))  # fold skip bias

    dw_slab = jnp.concatenate(dw_slabs, axis=0)                    # (n_stages*9, cp, L)
    pww = jnp.stack(pw_ws)                                         # (n_stages+1, cp, cp)
    pwb = jnp.stack(pw_bs, axis=1)                                 # (cp, n_stages)

    kernel = _make_block_kernel(n_stages, tuple(relu_flags),
                                tuple(cin_per_stage), cin, width)

    y = pl.pallas_call(
        kernel,
        out_shape=jax.ShapeDtypeStruct((cp, n_pad * s), jnp.float32),
        grid=(n_pad // nb,),
        in_specs=[
            pl.BlockSpec((cp, lanes), lambda i: (0, i)),
            pl.BlockSpec((n_stages * 9, cp, lanes), lambda i: (0, 0, 0)),
            pl.BlockSpec((n_stages + 1, cp, cp), lambda i: (0, 0, 0)),
            pl.BlockSpec((cp, n_stages), lambda i: (0, 0)),
        ],
        out_specs=pl.BlockSpec((cp, lanes), lambda i: (0, i)),
        compiler_params=pltpu.CompilerParams(dimension_semantics=("parallel",)),
    )(x_packed, dw_slab, pww, pwb)

    # ---- unpack (Cp, n_pad*S) -> NCHW, then the deferred stride-`stride` subsample.
    y = jnp.transpose(y.reshape(cp, n_pad, height, width), (1, 0, 2, 3))
    return y[:n, :cout, ::stride, ::stride]


# ------------------------------ parameters ------------------------------------


def make_block_params(key, inplanes, planes, num_reps, stride):
    eps = 1e-5
    keys = iter(jax.random.split(key, 64))

    def folded_bn(c):
        gamma = jax.random.uniform(next(keys), (c,), jnp.float32, 0.5, 1.5)
        beta = 0.1 * jax.random.normal(next(keys), (c,), jnp.float32)
        mean = 0.1 * jax.random.normal(next(keys), (c,), jnp.float32)
        var = jax.random.uniform(next(keys), (c,), jnp.float32, 0.5, 1.5)
        scale = gamma * lax.rsqrt(var + eps)
        return scale, beta - mean * scale

    def sep_stage(cin, cout, relu, st):
        w_dw = jax.random.normal(next(keys), (3, 3, cin), jnp.float32) / 3.0
        s_dw, b_dw = folded_bn(cin)                  # SeparableConv2d.bn
        w_pw = jax.random.normal(next(keys), (cin, cout), jnp.float32) / jnp.sqrt(cin)
        s_pw, b_pw = folded_bn(cout)                 # outer rep bnX
        return dict(w_dw=w_dw, s_dw=s_dw, b_dw=b_dw,
                    w_pw=w_pw, s_pw=s_pw, b_pw=b_pw, relu=relu, stride=st)

    # mirrors Block.__init__ with grow_first=True, start_with_relu=True, is_last=False
    stages = [sep_stage(inplanes, planes, relu=True, st=1)]
    for _ in range(num_reps - 1):
        stages.append(sep_stage(planes, planes, relu=True, st=1))
    if stride != 1:
        stages.append(sep_stage(planes, planes, relu=True, st=stride))

    w_skip = (jax.random.normal(next(keys), (inplanes, planes), jnp.float32)
              / jnp.sqrt(inplanes))
    s_skip, b_skip = folded_bn(planes)
    return dict(stages=stages, w_skip=w_skip, s_skip=s_skip, b_skip=b_skip,
                skip_stride=stride)


# ------------------------------ pure-JAX reference ----------------------------


def reference_block(x_nchw, params):
    def dwconv(x, w33c, st):
        c = x.shape[1]
        w = jnp.transpose(w33c, (2, 0, 1))[:, None, :, :]      # (C,1,3,3) OIHW
        return lax.conv_general_dilated(x, w, (st, st), ((1, 1), (1, 1)),
                                        feature_group_count=c,
                                        dimension_numbers=("NCHW", "OIHW", "NCHW"))

    def pwconv(x, wio, st):
        w = jnp.transpose(wio, (1, 0))[:, :, None, None]       # (Cout,Cin,1,1)
        return lax.conv_general_dilated(x, w, (st, st), ((0, 0), (0, 0)),
                                        dimension_numbers=("NCHW", "OIHW", "NCHW"))

    def bn(x, s, b):
        return x * s[None, :, None, None] + b[None, :, None, None]

    h = x_nchw
    for st in params["stages"]:
        if st["relu"]:
            h = jnp.maximum(h, 0.0)
        h = dwconv(h, st["w_dw"], st["stride"])
        h = bn(h, st["s_dw"], st["b_dw"])
        h = pwconv(h, st["w_pw"], 1)
        h = bn(h, st["s_pw"], st["b_pw"])
    skip = bn(pwconv(x_nchw, params["w_skip"], params["skip_stride"]),
              params["s_skip"], params["b_skip"])
    return h + skip


# ------------------------------ main -------------------------------------------


if __name__ == "__main__":
    key = jax.random.PRNGKey(0)
    kx, kp = jax.random.split(key)

    inplanes, planes, num_reps, stride = 4, 8, 2, 2
    x = jax.random.normal(kx, (2, inplanes, 16, 16), jnp.float32)   # NCHW like PyTorch
    params = make_block_params(kp, inplanes, planes, num_reps, stride)

    out = jax.block_until_ready(block_forward(x, params))
    ref = jax.block_until_ready(reference_block(x, params))

    assert out.shape == (2, planes, 16 // stride, 16 // stride), out.shape
    assert bool(jnp.allclose(out, ref, atol=1e-4, rtol=1e-4)), \
        float(jnp.max(jnp.abs(out - ref)))
    print("KERNEL_OK")
</pallas_src>

<mosaic_0001>
module attributes {stable_mosaic.version = 11 : i64} {
  func.func @kernel(%arg0: i32, %arg1: memref<8x512xf32, #tpu.memory_space<vmem>>, %arg2: memref<27x8x512xf32, #tpu.memory_space<vmem>>, %arg3: memref<4x8x8xf32, #tpu.memory_space<vmem>>, %arg4: memref<8x3xf32, #tpu.memory_space<vmem>>, %arg5: memref<8x512xf32, #tpu.memory_space<vmem>>) attributes {dimension_semantics = [#tpu.dimension_semantics<parallel>], iteration_bounds = array<i64: 1>, scalar_prefetch = 0 : i64, scratch_operands = 0 : i64, tpu.core_type = #tpu.core_type<tc>, window_params = [{transform_indices = @transform_0, window_bounds = array<i64: 8, 512>}, {pipeline_mode = #tpu.pipeline_mode<synchronous>, transform_indices = @transform_1, window_bounds = array<i64: 27, 8, 512>}, {pipeline_mode = #tpu.pipeline_mode<synchronous>, transform_indices = @transform_2, window_bounds = array<i64: 4, 8, 8>}, {pipeline_mode = #tpu.pipeline_mode<synchronous>, transform_indices = @transform_3, window_bounds = array<i64: 8, 3>}, {transform_indices = @transform_4, window_bounds = array<i64: 8, 512>}]} {
    %c0 = arith.constant 0 : index
    %c0_0 = arith.constant 0 : index
    %0 = vector.load %arg1[%c0, %c0_0] : memref<8x512xf32, #tpu.memory_space<vmem>>, vector<8x512xf32>
    %cst = arith.constant 0.000000e+00 : f32
    %1 = vector.broadcast %cst : f32 to vector<8x512xf32>
    %2 = arith.maximumf %0, %1 : vector<8x512xf32>
    %c17_i32 = arith.constant 17 : i32
    %3 = tpu.dynamic_rotate %2 by %c17_i32 dim 1 : vector<8x512xf32>, i32 -> vector<8x512xf32>
    %c0_1 = arith.constant 0 : index
    %c0_2 = arith.constant 0 : index
    %c0_3 = arith.constant 0 : index
    %4 = vector.load %arg2[%c0_1, %c0_2, %c0_3] : memref<27x8x512xf32, #tpu.memory_space<vmem>>, vector<1x8x512xf32>
    %5 = vector.shape_cast %4 : vector<1x8x512xf32> to vector<8x512xf32>
    %6 = arith.mulf %3, %5 : vector<8x512xf32>
    %c16_i32 = arith.constant 16 : i32
    %7 = tpu.dynamic_rotate %2 by %c16_i32 dim 1 : vector<8x512xf32>, i32 -> vector<8x512xf32>
    %c1 = arith.constant 1 : index
    %c0_4 = arith.constant 0 : index
    %c0_5 = arith.constant 0 : index
    %8 = vector.load %arg2[%c1, %c0_4, %c0_5] : memref<27x8x512xf32, #tpu.memory_space<vmem>>, vector<1x8x512xf32>
    %9 = vector.shape_cast %8 : vector<1x8x512xf32> to vector<8x512xf32>
    %10 = arith.mulf %7, %9 : vector<8x512xf32>
    %11 = arith.addf %6, %10 : vector<8x512xf32>
    %c15_i32 = arith.constant 15 : i32
    %12 = tpu.dynamic_rotate %2 by %c15_i32 dim 1 : vector<8x512xf32>, i32 -> vector<8x512xf32>
    %c2 = arith.constant 2 : index
    %c0_6 = arith.constant 0 : index
    %c0_7 = arith.constant 0 : index
    %13 = vector.load %arg2[%c2, %c0_6, %c0_7] : memref<27x8x512xf32, #tpu.memory_space<vmem>>, vector<1x8x512xf32>
    %14 = vector.shape_cast %13 : vector<1x8x512xf32> to vector<8x512xf32>
    %15 = arith.mulf %12, %14 : vector<8x512xf32>
    %16 = arith.addf %11, %15 : vector<8x512xf32>
    %c1_i32 = arith.constant 1 : i32
    %17 = tpu.dynamic_rotate %2 by %c1_i32 dim 1 : vector<8x512xf32>, i32 -> vector<8x512xf32>
    %c3 = arith.constant 3 : index
    %c0_8 = arith.constant 0 : index
    %c0_9 = arith.constant 0 : index
    %18 = vector.load %arg2[%c3, %c0_8, %c0_9] : memref<27x8x512xf32, #tpu.memory_space<vmem>>, vector<1x8x512xf32>
    %19 = vector.shape_cast %18 : vector<1x8x512xf32> to vector<8x512xf32>
    %20 = arith.mulf %17, %19 : vector<8x512xf32>
    %21 = arith.addf %16, %20 : vector<8x512xf32>
    %c4 = arith.constant 4 : index
    %c0_10 = arith.constant 0 : index
    %c0_11 = arith.constant 0 : index
    %22 = vector.load %arg2[%c4, %c0_10, %c0_11] : memref<27x8x512xf32, #tpu.memory_space<vmem>>, vector<1x8x512xf32>
    %23 = vector.shape_cast %22 : vector<1x8x512xf32> to vector<8x512xf32>
    %24 = arith.mulf %2, %23 : vector<8x512xf32>
    %25 = arith.addf %21, %24 : vector<8x512xf32>
    %c511_i32 = arith.constant 511 : i32
    %26 = tpu.dynamic_rotate %2 by %c511_i32 dim 1 : vector<8x512xf32>, i32 -> vector<8x512xf32>
    %c5 = arith.constant 5 : index
    %c0_12 = arith.constant 0 : index
    %c0_13 = arith.constant 0 : index
    %27 = vector.load %arg2[%c5, %c0_12, %c0_13] : memref<27x8x512xf32, #tpu.memory_space<vmem>>, vector<1x8x512xf32>
    %28 = vector.shape_cast %27 : vector<1x8x512xf32> to vector<8x512xf32>
    %29 = arith.mulf %26, %28 : vector<8x512xf32>
    %30 = arith.addf %25, %29 : vector<8x512xf32>
    %c497_i32 = arith.constant 497 : i32
    %31 = tpu.dynamic_rotate %2 by %c497_i32 dim 1 : vector<8x512xf32>, i32 -> vector<8x512xf32>
    %c6 = arith.constant 6 : index
    %c0_14 = arith.constant 0 : index
    %c0_15 = arith.constant 0 : index
    %32 = vector.load %arg2[%c6, %c0_14, %c0_15] : memref<27x8x512xf32, #tpu.memory_space<vmem>>, vector<1x8x512xf32>
    %33 = vector.shape_cast %32 : vector<1x8x512xf32> to vector<8x512xf32>
    %34 = arith.mulf %31, %33 : vector<8x512xf32>
    %35 = arith.addf %30, %34 : vector<8x512xf32>
    %c496_i32 = arith.constant 496 : i32
    %36 = tpu.dynamic_rotate %2 by %c496_i32 dim 1 : vector<8x512xf32>, i32 -> vector<8x512xf32>
    %c7 = arith.constant 7 : index
    %c0_16 = arith.constant 0 : index
    %c0_17 = arith.constant 0 : index
    %37 = vector.load %arg2[%c7, %c0_16, %c0_17] : memref<27x8x512xf32, #tpu.memory_space<vmem>>, vector<1x8x512xf32>
    %38 = vector.shape_cast %37 : vector<1x8x512xf32> to vector<8x512xf32>
    %39 = arith.mulf %36, %38 : vector<8x512xf32>
    %40 = arith.addf %35, %39 : vector<8x512xf32>
    %c495_i32 = arith.constant 495 : i32
    %41 = tpu.dynamic_rotate %2 by %c495_i32 dim 1 : vector<8x512xf32>, i32 -> vector<8x512xf32>
    %c8 = arith.constant 8 : index
    %c0_18 = arith.constant 0 : index
    %c0_19 = arith.constant 0 : index
    %42 = vector.load %arg2[%c8, %c0_18, %c0_19] : memref<27x8x512xf32, #tpu.memory_space<vmem>>, vector<1x8x512xf32>
    %43 = vector.shape_cast %42 : vector<1x8x512xf32> to vector<8x512xf32>
    %44 = arith.mulf %41, %43 : vector<8x512xf32>
    %45 = arith.addf %40, %44 : vector<8x512xf32>
    %c0_20 = arith.constant 0 : index
    %c0_21 = arith.constant 0 : index
    %c0_22 = arith.constant 0 : index
    %46 = vector.load %arg3[%c0_20, %c0_21, %c0_22] : memref<4x8x8xf32, #tpu.memory_space<vmem>>, vector<1x8x8xf32>
    %47 = vector.shape_cast %46 : vector<1x8x8xf32> to vector<8x8xf32>
    %48 = vector.extract_strided_slice %47 {offsets = [0, 0], sizes = [8, 1], strides = [1, 1]} : vector<8x8xf32> to vector<8x1xf32>
    %49 = vector.extract_strided_slice %45 {offsets = [0, 0], sizes = [1, 512], strides = [1, 1]} : vector<8x512xf32> to vector<1x512xf32>
    %50 = vector.broadcast %48 : vector<8x1xf32> to vector<8x512xf32>
    %51 = vector.broadcast %49 : vector<1x512xf32> to vector<8x512xf32>
    %52 = arith.mulf %50, %51 : vector<8x512xf32>
    %53 = vector.extract_strided_slice %47 {offsets = [0, 1], sizes = [8, 1], strides = [1, 1]} : vector<8x8xf32> to vector<8x1xf32>
    %54 = vector.extract_strided_slice %45 {offsets = [1, 0], sizes = [1, 512], strides = [1, 1]} : vector<8x512xf32> to vector<1x512xf32>
    %55 = vector.broadcast %53 : vector<8x1xf32> to vector<8x512xf32>
    %56 = vector.broadcast %54 : vector<1x512xf32> to vector<8x512xf32>
    %57 = arith.mulf %55, %56 : vector<8x512xf32>
    %58 = arith.addf %52, %57 : vector<8x512xf32>
    %59 = vector.extract_strided_slice %47 {offsets = [0, 2], sizes = [8, 1], strides = [1, 1]} : vector<8x8xf32> to vector<8x1xf32>
    %60 = vector.extract_strided_slice %45 {offsets = [2, 0], sizes = [1, 512], strides = [1, 1]} : vector<8x512xf32> to vector<1x512xf32>
    %61 = vector.broadcast %59 : vector<8x1xf32> to vector<8x512xf32>
    %62 = vector.broadcast %60 : vector<1x512xf32> to vector<8x512xf32>
    %63 = arith.mulf %61, %62 : vector<8x512xf32>
    %64 = arith.addf %58, %63 : vector<8x512xf32>
    %65 = vector.extract_strided_slice %47 {offsets = [0, 3], sizes = [8, 1], strides = [1, 1]} : vector<8x8xf32> to vector<8x1xf32>
    %66 = vector.extract_strided_slice %45 {offsets = [3, 0], sizes = [1, 512], strides = [1, 1]} : vector<8x512xf32> to vector<1x512xf32>
    %67 = vector.broadcast %65 : vector<8x1xf32> to vector<8x512xf32>
    %68 = vector.broadcast %66 : vector<1x512xf32> to vector<8x512xf32>
    %69 = arith.mulf %67, %68 : vector<8x512xf32>
    %70 = arith.addf %64, %69 : vector<8x512xf32>
    %c0_23 = arith.constant 0 : index
    %c0_24 = arith.constant 0 : index
    %71 = vector.load %arg4[%c0_23, %c0_24] : memref<8x3xf32, #tpu.memory_space<vmem>>, vector<8x1xf32>
    %72 = vector.broadcast %71 : vector<8x1xf32> to vector<8x512xf32>
    %73 = arith.addf %70, %72 : vector<8x512xf32>
    %cst_25 = arith.constant 0.000000e+00 : f32
    %74 = vector.broadcast %cst_25 : f32 to vector<8x512xf32>
    %75 = arith.maximumf %73, %74 : vector<8x512xf32>
    %c17_i32_26 = arith.constant 17 : i32
    %76 = tpu.dynamic_rotate %75 by %c17_i32_26 dim 1 : vector<8x512xf32>, i32 -> vector<8x512xf32>
    %c9 = arith.constant 9 : index
    %c0_27 = arith.constant 0 : index
    %c0_28 = arith.constant 0 : index
    %77 = vector.load %arg2[%c9, %c0_27, %c0_28] : memref<27x8x512xf32, #tpu.memory_space<vmem>>, vector<1x8x512xf32>
    %78 = vector.shape_cast %77 : vector<1x8x512xf32> to vector<8x512xf32>
    %79 = arith.mulf %76, %78 : vector<8x512xf32>
    %c16_i32_29 = arith.constant 16 : i32
    %80 = tpu.dynamic_rotate %75 by %c16_i32_29 dim 1 : vector<8x512xf32>, i32 -> vector<8x512xf32>
    %c10 = arith.constant 10 : index
    %c0_30 = arith.constant 0 : index
    %c0_31 = arith.constant 0 : index
    %81 = vector.load %arg2[%c10, %c0_30, %c0_31] : memref<27x8x512xf32, #tpu.memory_space<vmem>>, vector<1x8x512xf32>
    %82 = vector.shape_cast %81 : vector<1x8x512xf32> to vector<8x512xf32>
    %83 = arith.mulf %80, %82 : vector<8x512xf32>
    %84 = arith.addf %79, %83 : vector<8x512xf32>
    %c15_i32_32 = arith.constant 15 : i32
    %85 = tpu.dynamic_rotate %75 by %c15_i32_32 dim 1 : vector<8x512xf32>, i32 -> vector<8x512xf32>
    %c11 = arith.constant 11 : index
    %c0_33 = arith.constant 0 : index
    %c0_34 = arith.constant 0 : index
    %86 = vector.load %arg2[%c11, %c0_33, %c0_34] : memref<27x8x512xf32, #tpu.memory_space<vmem>>, vector<1x8x512xf32>
    %87 = vector.shape_cast %86 : vector<1x8x512xf32> to vector<8x512xf32>
    %88 = arith.mulf %85, %87 : vector<8x512xf32>
    %89 = arith.addf %84, %88 : vector<8x512xf32>
    %c1_i32_35 = arith.constant 1 : i32
    %90 = tpu.dynamic_rotate %75 by %c1_i32_35 dim 1 : vector<8x512xf32>, i32 -> vector<8x512xf32>
    %c12 = arith.constant 12 : index
    %c0_36 = arith.constant 0 : index
    %c0_37 = arith.constant 0 : index
    %91 = vector.load %arg2[%c12, %c0_36, %c0_37] : memref<27x8x512xf32, #tpu.memory_space<vmem>>, vector<1x8x512xf32>
    %92 = vector.shape_cast %91 : vector<1x8x512xf32> to vector<8x512xf32>
    %93 = arith.mulf %90, %92 : vector<8x512xf32>
    %94 = arith.addf %89, %93 : vector<8x512xf32>
    %c13 = arith.constant 13 : index
    %c0_38 = arith.constant 0 : index
    %c0_39 = arith.constant 0 : index
    %95 = vector.load %arg2[%c13, %c0_38, %c0_39] : memref<27x8x512xf32, #tpu.memory_space<vmem>>, vector<1x8x512xf32>
    %96 = vector.shape_cast %95 : vector<1x8x512xf32> to vector<8x512xf32>
    %97 = arith.mulf %75, %96 : vector<8x512xf32>
    %98 = arith.addf %94, %97 : vector<8x512xf32>
    %c511_i32_40 = arith.constant 511 : i32
    %99 = tpu.dynamic_rotate %75 by %c511_i32_40 dim 1 : vector<8x512xf32>, i32 -> vector<8x512xf32>
    %c14 = arith.constant 14 : index
    %c0_41 = arith.constant 0 : index
    %c0_42 = arith.constant 0 : index
    %100 = vector.load %arg2[%c14, %c0_41, %c0_42] : memref<27x8x512xf32, #tpu.memory_space<vmem>>, vector<1x8x512xf32>
    %101 = vector.shape_cast %100 : vector<1x8x512xf32> to vector<8x512xf32>
    %102 = arith.mulf %99, %101 : vector<8x512xf32>
    %103 = arith.addf %98, %102 : vector<8x512xf32>
    %c497_i32_43 = arith.constant 497 : i32
    %104 = tpu.dynamic_rotate %75 by %c497_i32_43 dim 1 : vector<8x512xf32>, i32 -> vector<8x512xf32>
    %c15 = arith.constant 15 : index
    %c0_44 = arith.constant 0 : index
    %c0_45 = arith.constant 0 : index
    %105 = vector.load %arg2[%c15, %c0_44, %c0_45] : memref<27x8x512xf32, #tpu.memory_space<vmem>>, vector<1x8x512xf32>
    %106 = vector.shape_cast %105 : vector<1x8x512xf32> to vector<8x512xf32>
    %107 = arith.mulf %104, %106 : vector<8x512xf32>
    %108 = arith.addf %103, %107 : vector<8x512xf32>
    %c496_i32_46 = arith.constant 496 : i32
    %109 = tpu.dynamic_rotate %75 by %c496_i32_46 dim 1 : vector<8x512xf32>, i32 -> vector<8x512xf32>
    %c16 = arith.constant 16 : index
    %c0_47 = arith.constant 0 : index
    %c0_48 = arith.constant 0 : index
    %110 = vector.load %arg2[%c16, %c0_47, %c0_48] : memref<27x8x512xf32, #tpu.memory_space<vmem>>, vector<1x8x512xf32>
    %111 = vector.shape_cast %110 : vector<1x8x512xf32> to vector<8x512xf32>
    %112 = arith.mulf %109, %111 : vector<8x512xf32>
    %113 = arith.addf %108, %112 : vector<8x512xf32>
    %c495_i32_49 = arith.constant 495 : i32
    %114 = tpu.dynamic_rotate %75 by %c495_i32_49 dim 1 : vector<8x512xf32>, i32 -> vector<8x512xf32>
    %c17 = arith.constant 17 : index
    %c0_50 = arith.constant 0 : index
    %c0_51 = arith.constant 0 : index
    %115 = vector.load %arg2[%c17, %c0_50, %c0_51] : memref<27x8x512xf32, #tpu.memory_space<vmem>>, vector<1x8x512xf32>
    %116 = vector.shape_cast %115 : vector<1x8x512xf32> to vector<8x512xf32>
    %117 = arith.mulf %114, %116 : vector<8x512xf32>
    %118 = arith.addf %113, %117 : vector<8x512xf32>
    %c1_52 = arith.constant 1 : index
    %c0_53 = arith.constant 0 : index
    %c0_54 = arith.constant 0 : index
    %119 = vector.load %arg3[%c1_52, %c0_53, %c0_54] : memref<4x8x8xf32, #tpu.memory_space<vmem>>, vector<1x8x8xf32>
    %120 = vector.shape_cast %119 : vector<1x8x8xf32> to vector<8x8xf32>
    %121 = vector.extract_strided_slice %120 {offsets = [0, 0], sizes = [8, 1], strides = [1, 1]} : vector<8x8xf32> to vector<8x1xf32>
    %122 = vector.extract_strided_slice %118 {offsets = [0, 0], sizes = [1, 512], strides = [1, 1]} : vector<8x512xf32> to vector<1x512xf32>
    %123 = vector.broadcast %121 : vector<8x1xf32> to vector<8x512xf32>
    %124 = vector.broadcast %122 : vector<1x512xf32> to vector<8x512xf32>
    %125 = arith.mulf %123, %124 : vector<8x512xf32>
    %126 = vector.extract_strided_slice %120 {offsets = [0, 1], sizes = [8, 1], strides = [1, 1]} : vector<8x8xf32> to vector<8x1xf32>
    %127 = vector.extract_strided_slice %118 {offsets = [1, 0], sizes = [1, 512], strides = [1, 1]} : vector<8x512xf32> to vector<1x512xf32>
    %128 = vector.broadcast %126 : vector<8x1xf32> to vector<8x512xf32>
    %129 = vector.broadcast %127 : vector<1x512xf32> to vector<8x512xf32>
    %130 = arith.mulf %128, %129 : vector<8x512xf32>
    %131 = arith.addf %125, %130 : vector<8x512xf32>
    %132 = vector.extract_strided_slice %120 {offsets = [0, 2], sizes = [8, 1], strides = [1, 1]} : vector<8x8xf32> to vector<8x1xf32>
    %133 = vector.extract_strided_slice %118 {offsets = [2, 0], sizes = [1, 512], strides = [1, 1]} : vector<8x512xf32> to vector<1x512xf32>
    %134 = vector.broadcast %132 : vector<8x1xf32> to vector<8x512xf32>
    %135 = vector.broadcast %133 : vector<1x512xf32> to vector<8x512xf32>
    %136 = arith.mulf %134, %135 : vector<8x512xf32>
    %137 = arith.addf %131, %136 : vector<8x512xf32>
    %138 = vector.extract_strided_slice %120 {offsets = [0, 3], sizes = [8, 1], strides = [1, 1]} : vector<8x8xf32> to vector<8x1xf32>
    %139 = vector.extract_strided_slice %118 {offsets = [3, 0], sizes = [1, 512], strides = [1, 1]} : vector<8x512xf32> to vector<1x512xf32>
    %140 = vector.broadcast %138 : vector<8x1xf32> to vector<8x512xf32>
    %141 = vector.broadcast %139 : vector<1x512xf32> to vector<8x512xf32>
    %142 = arith.mulf %140, %141 : vector<8x512xf32>
    %143 = arith.addf %137, %142 : vector<8x512xf32>
    %144 = vector.extract_strided_slice %120 {offsets = [0, 4], sizes = [8, 1], strides = [1, 1]} : vector<8x8xf32> to vector<8x1xf32>
    %145 = vector.extract_strided_slice %118 {offsets = [4, 0], sizes = [1, 512], strides = [1, 1]} : vector<8x512xf32> to vector<1x512xf32>
    %146 = vector.broadcast %144 : vector<8x1xf32> to vector<8x512xf32>
    %147 = vector.broadcast %145 : vector<1x512xf32> to vector<8x512xf32>
    %148 = arith.mulf %146, %147 : vector<8x512xf32>
    %149 = arith.addf %143, %148 : vector<8x512xf32>
    %150 = vector.extract_strided_slice %120 {offsets = [0, 5], sizes = [8, 1], strides = [1, 1]} : vector<8x8xf32> to vector<8x1xf32>
    %151 = vector.extract_strided_slice %118 {offsets = [5, 0], sizes = [1, 512], strides = [1, 1]} : vector<8x512xf32> to vector<1x512xf32>
    %152 = vector.broadcast %150 : vector<8x1xf32> to vector<8x512xf32>
    %153 = vector.broadcast %151 : vector<1x512xf32> to vector<8x512xf32>
    %154 = arith.mulf %152, %153 : vector<8x512xf32>
    %155 = arith.addf %149, %154 : vector<8x512xf32>
    %156 = vector.extract_strided_slice %120 {offsets = [0, 6], sizes = [8, 1], strides = [1, 1]} : vector<8x8xf32> to vector<8x1xf32>
    %157 = vector.extract_strided_slice %118 {offsets = [6, 0], sizes = [1, 512], strides = [1, 1]} : vector<8x512xf32> to vector<1x512xf32>
    %158 = vector.broadcast %156 : vector<8x1xf32> to vector<8x512xf32>
    %159 = vector.broadcast %157 : vector<1x512xf32> to vector<8x512xf32>
    %160 = arith.mulf %158, %159 : vector<8x512xf32>
    %161 = arith.addf %155, %160 : vector<8x512xf32>
    %162 = vector.extract_strided_slice %120 {offsets = [0, 7], sizes = [8, 1], strides = [1, 1]} : vector<8x8xf32> to vector<8x1xf32>
    %163 = vector.extract_strided_slice %118 {offsets = [7, 0], sizes = [1, 512], strides = [1, 1]} : vector<8x512xf32> to vector<1x512xf32>
    %164 = vector.broadcast %162 : vector<8x1xf32> to vector<8x512xf32>
    %165 = vector.broadcast %163 : vector<1x512xf32> to vector<8x512xf32>
    %166 = arith.mulf %164, %165 : vector<8x512xf32>
    %167 = arith.addf %161, %166 : vector<8x512xf32>
    %c0_55 = arith.constant 0 : index
    %c1_56 = arith.constant 1 : index
    %168 = vector.load %arg4[%c0_55, %c1_56] : memref<8x3xf32, #tpu.memory_space<vmem>>, vector<8x1xf32>
    %169 = vector.broadcast %168 : vector<8x1xf32> to vector<8x512xf32>
    %170 = arith.addf %167, %169 : vector<8x512xf32>
    %cst_57 = arith.constant 0.000000e+00 : f32
    %171 = vector.broadcast %cst_57 : f32 to vector<8x512xf32>
    %172 = arith.maximumf %170, %171 : vector<8x512xf32>
    %c17_i32_58 = arith.constant 17 : i32
    %173 = tpu.dynamic_rotate %172 by %c17_i32_58 dim 1 : vector<8x512xf32>, i32 -> vector<8x512xf32>
    %c18 = arith.constant 18 : index
    %c0_59 = arith.constant 0 : index
    %c0_60 = arith.constant 0 : index
    %174 = vector.load %arg2[%c18, %c0_59, %c0_60] : memref<27x8x512xf32, #tpu.memory_space<vmem>>, vector<1x8x512xf32>
    %175 = vector.shape_cast %174 : vector<1x8x512xf32> to vector<8x512xf32>
    %176 = arith.mulf %173, %175 : vector<8x512xf32>
    %c16_i32_61 = arith.constant 16 : i32
    %177 = tpu.dynamic_rotate %172 by %c16_i32_61 dim 1 : vector<8x512xf32>, i32 -> vector<8x512xf32>
    %c19 = arith.constant 19 : index
    %c0_62 = arith.constant 0 : index
    %c0_63 = arith.constant 0 : index
    %178 = vector.load %arg2[%c19, %c0_62, %c0_63] : memref<27x8x512xf32, #tpu.memory_space<vmem>>, vector<1x8x512xf32>
    %179 = vector.shape_cast %178 : vector<1x8x512xf32> to vector<8x512xf32>
    %180 = arith.mulf %177, %179 : vector<8x512xf32>
    %181 = arith.addf %176, %180 : vector<8x512xf32>
    %c15_i32_64 = arith.constant 15 : i32
    %182 = tpu.dynamic_rotate %172 by %c15_i32_64 dim 1 : vector<8x512xf32>, i32 -> vector<8x512xf32>
    %c20 = arith.constant 20 : index
    %c0_65 = arith.constant 0 : index
    %c0_66 = arith.constant 0 : index
    %183 = vector.load %arg2[%c20, %c0_65, %c0_66] : memref<27x8x512xf32, #tpu.memory_space<vmem>>, vector<1x8x512xf32>
    %184 = vector.shape_cast %183 : vector<1x8x512xf32> to vector<8x512xf32>
    %185 = arith.mulf %182, %184 : vector<8x512xf32>
    %186 = arith.addf %181, %185 : vector<8x512xf32>
    %c1_i32_67 = arith.constant 1 : i32
    %187 = tpu.dynamic_rotate %172 by %c1_i32_67 dim 1 : vector<8x512xf32>, i32 -> vector<8x512xf32>
    %c21 = arith.constant 21 : index
    %c0_68 = arith.constant 0 : index
    %c0_69 = arith.constant 0 : index
    %188 = vector.load %arg2[%c21, %c0_68, %c0_69] : memref<27x8x512xf32, #tpu.memory_space<vmem>>, vector<1x8x512xf32>
    %189 = vector.shape_cast %188 : vector<1x8x512xf32> to vector<8x512xf32>
    %190 = arith.mulf %187, %189 : vector<8x512xf32>
    %191 = arith.addf %186, %190 : vector<8x512xf32>
    %c22 = arith.constant 22 : index
    %c0_70 = arith.constant 0 : index
    %c0_71 = arith.constant 0 : index
    %192 = vector.load %arg2[%c22, %c0_70, %c0_71] : memref<27x8x512xf32, #tpu.memory_space<vmem>>, vector<1x8x512xf32>
    %193 = vector.shape_cast %192 : vector<1x8x512xf32> to vector<8x512xf32>
    %194 = arith.mulf %172, %193 : vector<8x512xf32>
    %195 = arith.addf %191, %194 : vector<8x512xf32>
    %c511_i32_72 = arith.constant 511 : i32
    %196 = tpu.dynamic_rotate %172 by %c511_i32_72 dim 1 : vector<8x512xf32>, i32 -> vector<8x512xf32>
    %c23 = arith.constant 23 : index
    %c0_73 = arith.constant 0 : index
    %c0_74 = arith.constant 0 : index
    %197 = vector.load %arg2[%c23, %c0_73, %c0_74] : memref<27x8x512xf32, #tpu.memory_space<vmem>>, vector<1x8x512xf32>
    %198 = vector.shape_cast %197 : vector<1x8x512xf32> to vector<8x512xf32>
    %199 = arith.mulf %196, %198 : vector<8x512xf32>
    %200 = arith.addf %195, %199 : vector<8x512xf32>
    %c497_i32_75 = arith.constant 497 : i32
    %201 = tpu.dynamic_rotate %172 by %c497_i32_75 dim 1 : vector<8x512xf32>, i32 -> vector<8x512xf32>
    %c24 = arith.constant 24 : index
    %c0_76 = arith.constant 0 : index
    %c0_77 = arith.constant 0 : index
    %202 = vector.load %arg2[%c24, %c0_76, %c0_77] : memref<27x8x512xf32, #tpu.memory_space<vmem>>, vector<1x8x512xf32>
    %203 = vector.shape_cast %202 : vector<1x8x512xf32> to vector<8x512xf32>
    %204 = arith.mulf %201, %203 : vector<8x512xf32>
    %205 = arith.addf %200, %204 : vector<8x512xf32>
    %c496_i32_78 = arith.constant 496 : i32
    %206 = tpu.dynamic_rotate %172 by %c496_i32_78 dim 1 : vector<8x512xf32>, i32 -> vector<8x512xf32>
    %c25 = arith.constant 25 : index
    %c0_79 = arith.constant 0 : index
    %c0_80 = arith.constant 0 : index
    %207 = vector.load %arg2[%c25, %c0_79, %c0_80] : memref<27x8x512xf32, #tpu.memory_space<vmem>>, vector<1x8x512xf32>
    %208 = vector.shape_cast %207 : vector<1x8x512xf32> to vector<8x512xf32>
    %209 = arith.mulf %206, %208 : vector<8x512xf32>
    %210 = arith.addf %205, %209 : vector<8x512xf32>
    %c495_i32_81 = arith.constant 495 : i32
    %211 = tpu.dynamic_rotate %172 by %c495_i32_81 dim 1 : vector<8x512xf32>, i32 -> vector<8x512xf32>
    %c26 = arith.constant 26 : index
    %c0_82 = arith.constant 0 : index
    %c0_83 = arith.constant 0 : index
    %212 = vector.load %arg2[%c26, %c0_82, %c0_83] : memref<27x8x512xf32, #tpu.memory_space<vmem>>, vector<1x8x512xf32>
    %213 = vector.shape_cast %212 : vector<1x8x512xf32> to vector<8x512xf32>
    %214 = arith.mulf %211, %213 : vector<8x512xf32>
    %215 = arith.addf %210, %214 : vector<8x512xf32>
    %c2_84 = arith.constant 2 : index
    %c0_85 = arith.constant 0 : index
    %c0_86 = arith.constant 0 : index
    %216 = vector.load %arg3[%c2_84, %c0_85, %c0_86] : memref<4x8x8xf32, #tpu.memory_space<vmem>>, vector<1x8x8xf32>
    %217 = vector.shape_cast %216 : vector<1x8x8xf32> to vector<8x8xf32>
    %218 = vector.extract_strided_slice %217 {offsets = [0, 0], sizes = [8, 1], strides = [1, 1]} : vector<8x8xf32> to vector<8x1xf32>
    %219 = vector.extract_strided_slice %215 {offsets = [0, 0], sizes = [1, 512], strides = [1, 1]} : vector<8x512xf32> to vector<1x512xf32>
    %220 = vector.broadcast %218 : vector<8x1xf32> to vector<8x512xf32>
    %221 = vector.broadcast %219 : vector<1x512xf32> to vector<8x512xf32>
    %222 = arith.mulf %220, %221 : vector<8x512xf32>
    %223 = vector.extract_strided_slice %217 {offsets = [0, 1], sizes = [8, 1], strides = [1, 1]} : vector<8x8xf32> to vector<8x1xf32>
    %224 = vector.extract_strided_slice %215 {offsets = [1, 0], sizes = [1, 512], strides = [1, 1]} : vector<8x512xf32> to vector<1x512xf32>
    %225 = vector.broadcast %223 : vector<8x1xf32> to vector<8x512xf32>
    %226 = vector.broadcast %224 : vector<1x512xf32> to vector<8x512xf32>
    %227 = arith.mulf %225, %226 : vector<8x512xf32>
    %228 = arith.addf %222, %227 : vector<8x512xf32>
    %229 = vector.extract_strided_slice %217 {offsets = [0, 2], sizes = [8, 1], strides = [1, 1]} : vector<8x8xf32> to vector<8x1xf32>
    %230 = vector.extract_strided_slice %215 {offsets = [2, 0], sizes = [1, 512], strides = [1, 1]} : vector<8x512xf32> to vector<1x512xf32>
    %231 = vector.broadcast %229 : vector<8x1xf32> to vector<8x512xf32>
    %232 = vector.broadcast %230 : vector<1x512xf32> to vector<8x512xf32>
    %233 = arith.mulf %231, %232 : vector<8x512xf32>
    %234 = arith.addf %228, %233 : vector<8x512xf32>
    %235 = vector.extract_strided_slice %217 {offsets = [0, 3], sizes = [8, 1], strides = [1, 1]} : vector<8x8xf32> to vector<8x1xf32>
    %236 = vector.extract_strided_slice %215 {offsets = [3, 0], sizes = [1, 512], strides = [1, 1]} : vector<8x512xf32> to vector<1x512xf32>
    %237 = vector.broadcast %235 : vector<8x1xf32> to vector<8x512xf32>
    %238 = vector.broadcast %236 : vector<1x512xf32> to vector<8x512xf32>
    %239 = arith.mulf %237, %238 : vector<8x512xf32>
    %240 = arith.addf %234, %239 : vector<8x512xf32>
    %241 = vector.extract_strided_slice %217 {offsets = [0, 4], sizes = [8, 1], strides = [1, 1]} : vector<8x8xf32> to vector<8x1xf32>
    %242 = vector.extract_strided_slice %215 {offsets = [4, 0], sizes = [1, 512], strides = [1, 1]} : vector<8x512xf32> to vector<1x512xf32>
    %243 = vector.broadcast %241 : vector<8x1xf32> to vector<8x512xf32>
    %244 = vector.broadcast %242 : vector<1x512xf32> to vector<8x512xf32>
    %245 = arith.mulf %243, %244 : vector<8x512xf32>
    %246 = arith.addf %240, %245 : vector<8x512xf32>
    %247 = vector.extract_strided_slice %217 {offsets = [0, 5], sizes = [8, 1], strides = [1, 1]} : vector<8x8xf32> to vector<8x1xf32>
    %248 = vector.extract_strided_slice %215 {offsets = [5, 0], sizes = [1, 512], strides = [1, 1]} : vector<8x512xf32> to vector<1x512xf32>
    %249 = vector.broadcast %247 : vector<8x1xf32> to vector<8x512xf32>
    %250 = vector.broadcast %248 : vector<1x512xf32> to vector<8x512xf32>
    %251 = arith.mulf %249, %250 : vector<8x512xf32>
    %252 = arith.addf %246, %251 : vector<8x512xf32>
    %253 = vector.extract_strided_slice %217 {offsets = [0, 6], sizes = [8, 1], strides = [1, 1]} : vector<8x8xf32> to vector<8x1xf32>
    %254 = vector.extract_strided_slice %215 {offsets = [6, 0], sizes = [1, 512], strides = [1, 1]} : vector<8x512xf32> to vector<1x512xf32>
    %255 = vector.broadcast %253 : vector<8x1xf32> to vector<8x512xf32>
    %256 = vector.broadcast %254 : vector<1x512xf32> to vector<8x512xf32>
    %257 = arith.mulf %255, %256 : vector<8x512xf32>
    %258 = arith.addf %252, %257 : vector<8x512xf32>
    %259 = vector.extract_strided_slice %217 {offsets = [0, 7], sizes = [8, 1], strides = [1, 1]} : vector<8x8xf32> to vector<8x1xf32>
    %260 = vector.extract_strided_slice %215 {offsets = [7, 0], sizes = [1, 512], strides = [1, 1]} : vector<8x512xf32> to vector<1x512xf32>
    %261 = vector.broadcast %259 : vector<8x1xf32> to vector<8x512xf32>
    %262 = vector.broadcast %260 : vector<1x512xf32> to vector<8x512xf32>
    %263 = arith.mulf %261, %262 : vector<8x512xf32>
    %264 = arith.addf %258, %263 : vector<8x512xf32>
    %c3_87 = arith.constant 3 : index
    %c0_88 = arith.constant 0 : index
    %c0_89 = arith.constant 0 : index
    %265 = vector.load %arg3[%c3_87, %c0_88, %c0_89] : memref<4x8x8xf32, #tpu.memory_space<vmem>>, vector<1x8x8xf32>
    %266 = vector.shape_cast %265 : vector<1x8x8xf32> to vector<8x8xf32>
    %267 = vector.extract_strided_slice %266 {offsets = [0, 0], sizes = [8, 1], strides = [1, 1]} : vector<8x8xf32> to vector<8x1xf32>
    %268 = vector.extract_strided_slice %0 {offsets = [0, 0], sizes = [1, 512], strides = [1, 1]} : vector<8x512xf32> to vector<1x512xf32>
    %269 = vector.broadcast %267 : vector<8x1xf32> to vector<8x512xf32>
    %270 = vector.broadcast %268 : vector<1x512xf32> to vector<8x512xf32>
    %271 = arith.mulf %269, %270 : vector<8x512xf32>
    %272 = vector.extract_strided_slice %266 {offsets = [0, 1], sizes = [8, 1], strides = [1, 1]} : vector<8x8xf32> to vector<8x1xf32>
    %273 = vector.extract_strided_slice %0 {offsets = [1, 0], sizes = [1, 512], strides = [1, 1]} : vector<8x512xf32> to vector<1x512xf32>
    %274 = vector.broadcast %272 : vector<8x1xf32> to vector<8x512xf32>
    %275 = vector.broadcast %273 : vector<1x512xf32> to vector<8x512xf32>
    %276 = arith.mulf %274, %275 : vector<8x512xf32>
    %277 = arith.addf %271, %276 : vector<8x512xf32>
    %278 = vector.extract_strided_slice %266 {offsets = [0, 2], sizes = [8, 1], strides = [1, 1]} : vector<8x8xf32> to vector<8x1xf32>
    %279 = vector.extract_strided_slice %0 {offsets = [2, 0], sizes = [1, 512], strides = [1, 1]} : vector<8x512xf32> to vector<1x512xf32>
    %280 = vector.broadcast %278 : vector<8x1xf32> to vector<8x512xf32>
    %281 = vector.broadcast %279 : vector<1x512xf32> to vector<8x512xf32>
    %282 = arith.mulf %280, %281 : vector<8x512xf32>
    %283 = arith.addf %277, %282 : vector<8x512xf32>
    %284 = vector.extract_strided_slice %266 {offsets = [0, 3], sizes = [8, 1], strides = [1, 1]} : vector<8x8xf32> to vector<8x1xf32>
    %285 = vector.extract_strided_slice %0 {offsets = [3, 0], sizes = [1, 512], strides = [1, 1]} : vector<8x512xf32> to vector<1x512xf32>
    %286 = vector.broadcast %284 : vector<8x1xf32> to vector<8x512xf32>
    %287 = vector.broadcast %285 : vector<1x512xf32> to vector<8x512xf32>
    %288 = arith.mulf %286, %287 : vector<8x512xf32>
    %289 = arith.addf %283, %288 : vector<8x512xf32>
    %290 = arith.addf %264, %289 : vector<8x512xf32>
    %c0_90 = arith.constant 0 : index
    %c2_91 = arith.constant 2 : index
    %291 = vector.load %arg4[%c0_90, %c2_91] : memref<8x3xf32, #tpu.memory_space<vmem>>, vector<8x1xf32>
    %292 = vector.broadcast %291 : vector<8x1xf32> to vector<8x512xf32>
    %293 = arith.addf %290, %292 : vector<8x512xf32>
    %c0_92 = arith.constant 0 : index
    %c0_93 = arith.constant 0 : index
    %294 = vector.load %arg5[%c0_92, %c0_93] : memref<8x512xf32, #tpu.memory_space<vmem>>, vector<8x512xf32>
    tpu.vector_store %arg5[%c0_92, %c0_93], %293 {strides = array<i32>} : memref<8x512xf32, #tpu.memory_space<vmem>>, vector<8x512xf32>,
    return
  }
  func.func @transform_0(%arg0: i32) -> (i32, i32) {
    %c0_i32 = arith.constant 0 : i32
    %c0_i32_0 = arith.constant 0 : i32
    return %c0_i32, %arg0 : i32, i32
  }
  func.func @transform_1(%arg0: i32) -> (i32, i32, i32) {
    %c0_i32 = arith.constant 0 : i32
    %c0_i32_0 = arith.constant 0 : i32
    %c0_i32_1 = arith.constant 0 : i32
    %c0_i32_2 = arith.constant 0 : i32
    return %c0_i32, %c0_i32_0, %c0_i32_1 : i32, i32, i32
  }
  func.func @transform_2(%arg0: i32) -> (i32, i32, i32) {
    %c0_i32 = arith.constant 0 : i32
    %c0_i32_0 = arith.constant 0 : i32
    %c0_i32_1 = arith.constant 0 : i32
    %c0_i32_2 = arith.constant 0 : i32
    return %c0_i32, %c0_i32_0, %c0_i32_1 : i32, i32, i32
  }
  func.func @transform_3(%arg0: i32) -> (i32, i32) {
    %c0_i32 = arith.constant 0 : i32
    %c0_i32_0 = arith.constant 0 : i32
    %c0_i32_1 = arith.constant 0 : i32
    return %c0_i32, %c0_i32_0 : i32, i32
  }
  func.func @transform_4(%arg0: i32) -> (i32, i32) {
    %c0_i32 = arith.constant 0 : i32
    %c0_i32_0 = arith.constant 0 : i32
    return %c0_i32, %arg0 : i32, i32
  }
}

</mosaic_0001>

<bundles_post_ra>
// kernel: tpu_custom_call.1
= control target key start
LH: loop header
LB: loop body
LE: loop exit
PB: predicated region body
PF: predicated region fallthrough
CT: control target
= control target key end

     0   :  { %9 = vsyncpa [#allocation3], 0  ;;  %s2612_s0 = inlined_call_operand.hbm [shape: f32[8,512], index: 0, kind: input, shape index: {}]   ;;  %s2613_s1 = inlined_call_operand.hbm [shape: f32[27,8,512], index: 1, kind: input, shape index: {}]   ;;  %s2614_s2 = inlined_call_operand.hbm [shape: f32[4,8,8], index: 2, kind: input, shape index: {}]   ;;  %s2615_s3 = inlined_call_operand.vmem [shape: f32[8,3], index: 3, kind: input, shape index: {}]   ;;  %s2616_s4 = inlined_call_operand.hbm [shape: f32[8,512], index: 4, kind: output, shape index: {}]  }
   0x1   :  { %10 = vsyncpa [#allocation6], 0 }
   0x2   :  { %11 = vsyncpa [#allocation4], 0  ;;  %s1575_s15 = smov [#allocation5]   ;;  %s1481_s19 = scalar_lea.hbm %s2613_s1, 13824 }
   0x3   :  { %s27_s16 = sshll.u32 %s1575_s15, 4  ;;  %p1482_p0 = scmp.ne.s32.totalorder %s2613_s1, %s1481_s19  ;;  %s28_s16 = int_to_ptr.vmem [resolvable:$true] %s27_s16 }
   0x4   :  { %p1485_p1 = scmp.lt.u32.totalorder %s1481_s19, %s2613_s1 }
   0x6   :  { %p1487_p2 = pnand %p1485_p1, %p1482_p0 }
   0x8   :  { %1490 = shalt.err (!%p1487_p2)
}
   0x9   :  { %s1491_s24 = scalar_lea.vmem %s28_s16, 13824  ;;  %p1496_p4 = scmp.lt.s32.totalorder %s28_s16, %s28_s16 }
   0xa   :  { %p1492_p3 = scmp.ne.s32.totalorder %s28_s16, %s1491_s24  ;;  %p1497_p5 = scmp.lt.s32.totalorder %s1491_s24, %s1491_s24 }
   0xc   :  { %p1498_p6 = por %p1497_p5, %p1496_p4 }
   0xe   :  { %p1499_p7 = pnand %p1498_p6, %p1492_p3 }
  0x10   :  { %1502 = shalt.err (!%p1499_p7)
}
  0x11   :  { %s1576_s25 = smov 512   ;;  %s1577_s26 = smov 32  }
  0x12   :  { %33 = dma.hbm_to_vmem [thread:$0]  %s2613_s1, 13824, %s28_s16, [#allocation6], %s1576_s25, %s1576_s25, %s1577_s26  }
  0x13   :  { %s1578_s29 = smov [#allocation2]   ;;  %s1579_s5 = smov [#allocation7]  }
  0x14   :  { %s18_s30 = sshll.u32 %s1578_s29, 4  ;;  %s39_s6 = sshll.u32 %s1579_s5, 4  ;;  %s19_s30 = int_to_ptr.vmem [resolvable:$true] %s18_s30  ;;  %s40_s6 = int_to_ptr.vmem [resolvable:$true] %s39_s6 }
  0x15   :  { %s1503_s9 = scalar_lea.hbm %s2612_s0, 512 }
  0x16   :  { %p1504_p8 = scmp.ne.s32.totalorder %s2612_s0, %s1503_s9  ;;  %p1507_p9 = scmp.lt.u32.totalorder %s1503_s9, %s2612_s0 }
  0x18   :  { %p1509_p10 = pnand %p1507_p9, %p1504_p8 }
  0x1a   :  { %1512 = shalt.err (!%p1509_p10)
}
  0x1b   :  { %s1513_s1 = scalar_lea.vmem %s19_s30, 512  ;;  %p1518_p12 = scmp.lt.s32.totalorder %s19_s30, %s19_s30 }
  0x1c   :  { %p1514_p11 = scmp.ne.s32.totalorder %s19_s30, %s1513_s1  ;;  %p1519_p13 = scmp.lt.s32.totalorder %s1513_s1, %s1513_s1 }
  0x1e   :  { %p1520_p0 = por %p1519_p13, %p1518_p12 }
  0x20   :  { %p1521_p1 = pnand %p1520_p0, %p1514_p11 }
  0x22   :  { %1524 = shalt.err (!%p1521_p1)
}
  0x23   :  { %21 = dma.hbm_to_vmem [thread:$0]  %s2612_s0, 512, %s19_s30, [#allocation3]  }
  0x24   :  { %s1525_s18 = scalar_lea.hbm %s2614_s2, 512 }
  0x25   :  { %p1526_p2 = scmp.ne.s32.totalorder %s2614_s2, %s1525_s18  ;;  %p1529_p3 = scmp.lt.u32.totalorder %s1525_s18, %s2614_s2 }
  0x27   :  { %p1531_p4 = pnand %p1529_p3, %p1526_p2 }
  0x29   :  { %1534 = shalt.err (!%p1531_p4)
}
  0x2a   :  { %s1535_s23 = scalar_lea.vmem %s40_s6, 512  ;;  %p1540_p6 = scmp.lt.s32.totalorder %s40_s6, %s40_s6 }
  0x2b   :  { %p1536_p5 = scmp.ne.s32.totalorder %s40_s6, %s1535_s23  ;;  %p1541_p7 = scmp.lt.s32.totalorder %s1535_s23, %s1535_s23 }
  0x2d   :  { %p1542_p8 = por %p1541_p7, %p1540_p6 }
  0x2f   :  { %p1543_p9 = pnand %p1542_p8, %p1536_p5 }
  0x31   :  { %1546 = shalt.err (!%p1543_p9)
}
  0x32   :  { %s1580_s0 = smov 128   ;;  %s1581_s24 = smov 8  }
  0x33   :  { %45 = dma.hbm_to_vmem [thread:$0]  %s2614_s2, 512, %s40_s6, [#allocation6], %s1580_s0, %s1580_s0, %s1581_s24  }
  0x34   :  { %1569 = dma.done.wait [#allocation3], 512  }
  0x35   :  { %1570 = vsyncadd [#allocation3], 4294966784 }
  0x36   :  { %1571 = dma.done.wait [#allocation6], 14336  }
  0x37   :  { %1572 = vsyncadd [#allocation6], 4294952960  ;;  %v1582_v0 = vmov 1   ;;  %v1583_v1 = vmov 0   ;;  %v59_v2 = vld [vmem:[#allocation2 + $0x10] sm:$0xff]  ;;  %v57_v3 = vld [vmem:[#allocation2] sm:$0xff]  ;;  %v73_v32 = vlaneseq }
  0x38   :  { %1451 = vset.pattern.permute.xlu1 %v1582_v0  ;;  %1450 = vset.pattern.permute.xlu0 %v1583_v1  ;;  %v60_v4 = vld [vmem:[#allocation2 + $0x18] sm:$0xff]  ;;  %v1662_v5 = vmax.f32 %v59_v2, 0.0  ;;  %v1664_v6 = vmax.f32 %v57_v3, 0.0  ;;  %v58_v7 = vld [vmem:[#allocation2 + $0x8] sm:$0xff]  ;;  %s1584_s27 = smov 17   ;;  %s1585_s2 = smov 16  }
  0x39   :  { %v1670_v8 = vmax.f32 %v60_v4, 0.0  ;;  %v1672_v9 = vmax.f32 %v58_v7, 0.0  ;;  %s1586_s28 = smov 15   ;;  %s1587_s29 = smov 1   ;;  %v283_v10 = vld [vmem:[#allocation7] sm:$0xff]  ;;  %v1592_v11 = vmov 2  }
  0x3a   :  { %69 = vrot.lane.b32.xlu1 %v1662_v5, %s1584_s27  ;;  %65 = vrot.lane.b32.xlu0 %v1664_v6, %s1584_s27  ;;  %s1588_s30 = smov 127   ;;  %s1589_s5 = smov 113   ;;  %v1593_v12 = vmov 3   ;;  %v1739_v13 = vld [vmem:[%s2615_s3] sm:$0xff]  ;;  %v1742_v14 = vld [vmem:[#allocation7 + $0x8] sm:$0xff]  ;;  %v1594_v29 = vmov 4  }
  0x3b   :  { %s1590_s6 = smov 112   ;;  %s1591_s7 = smov 111   ;;  %v1759_v35 = vand.u32 127, %v73_v32  ;;  %v80_v40 = vld [vmem:[#allocation5] sm:$0xff]  ;;  %v103_v44 = vld [vmem:[#allocation5 + $0x28] sm:$0xff]  ;;  %v104_v46 = vld [vmem:[#allocation5 + $0x30] sm:$0xff] }
  0x3c   :  { %v102_v41 = vld [vmem:[#allocation5 + $0x20] sm:$0xff]  ;;  %v105_v47 = vld [vmem:[#allocation5 + $0x38] sm:$0xff]  ;;  %v81_v54 = vld [vmem:[#allocation5 + $0x8] sm:$0xff] }
  0x3d   :  { %vm75_vm0 = vcmp.lt.s32.totalorder %v1759_v35, 17  ;;  %vm96_vm1 = vcmp.lt.s32.totalorder %v1759_v35, 16  ;;  %v83_v50 = vld [vmem:[#allocation5 + $0x18] sm:$0xff]  ;;  %vm122_vm2 = vcmp.lt.s32.totalorder %v1759_v35, 15  ;;  %vm148_vm3 = vcmp.lt.s32.totalorder %v1759_v35, 1  ;;  %v82_v55 = vld [vmem:[#allocation5 + $0x10] sm:$0xff] }
  0x3e   :  { %71 = vrot.lane.b32.xlu1 %v1670_v8, %s1584_s27  ;;  %67 = vrot.lane.b32.xlu0 %v1672_v9, %s1584_s27  ;;  %v128_v59 = vld [vmem:[#allocation5 + $0x40] sm:$0xff]  ;;  %v129_v3 = vld [vmem:[#allocation5 + $0x48] sm:$0xff]  ;;  %v130_v7 = vld [vmem:[#allocation5 + $0x50] sm:$0xff]  ;;  %vm187_vm4 = vcmp.lt.s32.totalorder %v1759_v35, 127  ;;  %vm213_vm5 = vcmp.lt.s32.totalorder %v1759_v35, 113  ;;  %vm239_vm6 = vcmp.lt.s32.totalorder %v1759_v35, 112 }
  0x3f   :  { %vm265_vm7 = vcmp.lt.s32.totalorder %v1759_v35, 111 }
  0x42   :  { %90 = vrot.lane.b32.xlu1 %v1672_v9, %s1585_s2  ;;  %88 = vrot.lane.b32.xlu0 %v1664_v6, %s1585_s2 }
  0x46   :  { %94 = vrot.lane.b32.xlu1 %v1670_v8, %s1585_s2  ;;  %92 = vrot.lane.b32.xlu0 %v1662_v5, %s1585_s2 }
  0x4a   :  { %116 = vrot.lane.b32.xlu1 %v1672_v9, %s1586_s28  ;;  %114 = vrot.lane.b32.xlu0 %v1664_v6, %s1586_s28 }
  0x4e   :  { %120 = vrot.lane.b32.xlu1 %v1670_v8, %s1586_s28  ;;  %118 = vrot.lane.b32.xlu0 %v1662_v5, %s1586_s28 }
  0x52   :  { %142 = vrot.lane.b32.xlu1 %v1672_v9, %s1587_s29  ;;  %140 = vrot.lane.b32.xlu0 %v1664_v6, %s1587_s29 }
  0x56   :  { %146 = vrot.lane.b32.xlu1 %v1670_v8, %s1587_s29  ;;  %144 = vrot.lane.b32.xlu0 %v1662_v5, %s1587_s29 }
  0x5a   :  { %181 = vrot.lane.b32.xlu1 %v1672_v9, %s1588_s30  ;;  %179 = vrot.lane.b32.xlu0 %v1664_v6, %s1588_s30 }
  0x5e   :  { %185 = vrot.lane.b32.xlu1 %v1670_v8, %s1588_s30  ;;  %183 = vrot.lane.b32.xlu0 %v1662_v5, %s1588_s30 }
  0x62   :  { %207 = vrot.lane.b32.xlu1 %v1672_v9, %s1589_s5  ;;  %205 = vrot.lane.b32.xlu0 %v1664_v6, %s1589_s5 }
  0x66   :  { %211 = vrot.lane.b32.xlu1 %v1670_v8, %s1589_s5  ;;  %209 = vrot.lane.b32.xlu0 %v1662_v5, %s1589_s5 }
  0x6a   :  { %233 = vrot.lane.b32.xlu1 %v1672_v9, %s1590_s6  ;;  %231 = vrot.lane.b32.xlu0 %v1664_v6, %s1590_s6 }
  0x6e   :  { %237 = vrot.lane.b32.xlu1 %v1670_v8, %s1590_s6  ;;  %235 = vrot.lane.b32.xlu0 %v1662_v5, %s1590_s6 }
  0x72   :  { %259 = vrot.lane.b32.xlu1 %v1672_v9, %s1591_s7  ;;  %257 = vrot.lane.b32.xlu0 %v1664_v6, %s1591_s7 }
  0x76   :  { %263 = vrot.lane.b32.xlu1 %v1670_v8, %s1591_s7  ;;  %261 = vrot.lane.b32.xlu0 %v1662_v5, %s1591_s7 }
  0x7a   :  { %310 = vperm.xlu1 %1451, %v283_v10   ;;  %286 = vperm.xlu0 %1450, %v283_v10  }
  0x7e   :  { %1452 = vset.pattern.permute.xlu1 %v1592_v11  ;;  %1453 = vset.pattern.permute.xlu0 %v1593_v12 }
  0x7f   :  { %338 = vperm.xlu1 %1452, %v283_v10   ;;  %366 = vperm.xlu0 %1453, %v283_v10   ;;  %v131_v10 = vld [vmem:[#allocation5 + $0x58] sm:$0xff] }
  0x83   :  { %1454 = vset.pattern.permute.xlu1 %v1583_v1  ;;  %1455 = vset.pattern.permute.xlu0 %v1582_v0 }
  0x84   :  { %396 = vperm.xlu1 %1454, %v1739_v13   ;;  %644 = vperm.xlu0 %1455, %v1742_v14  }
  0x88   :  { %620 = vperm.xlu1 %1454, %v1742_v14   ;;  %1458 = vset.pattern.permute.xlu0 %v1594_v29 }
  0x8c   :  { %1456 = vset.pattern.permute.xlu1 %v1592_v11 }
  0x8d   :  { %672 = vperm.xlu1 %1456, %v1742_v14  }
  0x91   :  { %1457 = vset.pattern.permute.xlu1 %v1593_v12 }
  0xac   :  { %v70_v15 = vpop.permute.xlu1 %69  ;;  %v66_v16 = vpop.permute.xlu0 %65 }
  0xb0   :  { %v72_v17 = vpop.permute.xlu1 %71  ;;  %v68_v18 = vpop.permute.xlu0 %67 }
  0xb1   :  { %v79_v43 = vsel %vm75_vm0, %v72_v17, %v66_v16  ;;  %v76_v51 = vsel %vm75_vm0, %v70_v15, %v72_v17  ;;  %v77_v56 = vsel %vm75_vm0, %v68_v18, %v70_v15  ;;  %v78_v57 = vsel %vm75_vm0, %v66_v16, %v68_v18  ;;  %v154_v17 = vld [vmem:[#allocation5 + $0x60] sm:$0xff] }
  0xb2   :  { %v84_v61 = vmul.f32 %v80_v40, %v79_v43  ;;  %v156_v43 = vld [vmem:[#allocation5 + $0x70] sm:$0xff] }
  0xb4   :  { %v91_v19 = vpop.permute.xlu1 %90  ;;  %v89_v20 = vpop.permute.xlu0 %88 }
  0xb5   :  { %v99_v45 = vsel %vm96_vm1, %v89_v20, %v91_v19 }
  0xb6   :  { %v107_v62 = vmul.f32 %v103_v44, %v99_v45 }
  0xb8   :  { %v95_v21 = vpop.permute.xlu1 %94  ;;  %v93_v22 = vpop.permute.xlu0 %92 }
  0xb9   :  { %v100_v42 = vsel %vm96_vm1, %v95_v21, %v89_v20  ;;  %v97_v48 = vsel %vm96_vm1, %v93_v22, %v95_v21  ;;  %v98_v49 = vsel %vm96_vm1, %v91_v19, %v93_v22  ;;  %v87_v19 = vmul.f32 %v83_v50, %v76_v51 }
  0xba   :  { %v106_v58 = vmul.f32 %v102_v41, %v100_v42  ;;  %v108_v63 = vmul.f32 %v104_v46, %v98_v49  ;;  %v109_v2 = vmul.f32 %v105_v47, %v97_v48  ;;  %v85_v20 = vmul.f32 %v81_v54, %v78_v57  ;;  %v155_v42 = vld [vmem:[#allocation5 + $0x68] sm:$0xff]  ;;  %v167_v49 = vld [vmem:[#allocation5 + $0x80] sm:$0xff] }
  0xbb   :  { %v86_v21 = vmul.f32 %v82_v55, %v77_v56 }
  0xbc   :  { %v117_v23 = vpop.permute.xlu1 %116  ;;  %v115_v24 = vpop.permute.xlu0 %114  ;;  %v111_v50 = vadd.f32 %v107_v62, %v85_v20  ;;  %v113_v54 = vadd.f32 %v109_v2, %v87_v19  ;;  %v196_v20 = vld [vmem:[#allocation5 + $0xb8] sm:$0xff] }
  0xbd   :  { %v125_v4 = vsel %vm122_vm2, %v115_v24, %v117_v23  ;;  %v112_v51 = vadd.f32 %v108_v63, %v86_v21 }
  0xbe   :  { %v133_v45 = vmul.f32 %v129_v3, %v125_v4 }
  0xc0   :  { %v121_v25 = vpop.permute.xlu1 %120  ;;  %v119_v26 = vpop.permute.xlu0 %118 }
  0xc1   :  { %v126_v60 = vsel %vm122_vm2, %v121_v25, %v115_v24  ;;  %v123_v15 = vsel %vm122_vm2, %v119_v26, %v121_v25  ;;  %v124_v16 = vsel %vm122_vm2, %v117_v23, %v119_v26  ;;  %v110_v24 = vadd.f32 %v106_v58, %v84_v61  ;;  %v157_v23 = vld [vmem:[#allocation5 + $0x78] sm:$0xff] }
  0xc2   :  { %v132_v22 = vmul.f32 %v128_v59, %v126_v60  ;;  %v134_v46 = vmul.f32 %v130_v7, %v124_v16  ;;  %v135_v47 = vmul.f32 %v131_v10, %v123_v15  ;;  %v170_v58 = vld [vmem:[#allocation5 + $0x98] sm:$0xff]  ;;  %v168_v59 = vld [vmem:[#allocation5 + $0x88] sm:$0xff]  ;;  %v169_v60 = vld [vmem:[#allocation5 + $0x90] sm:$0xff] }
  0xc3   :  { %v174_v62 = vmul.f32 %v170_v58, %v1670_v8  ;;  %v172_v63 = vmul.f32 %v168_v59, %v1672_v9  ;;  %v173_v2 = vmul.f32 %v169_v60, %v1662_v5  ;;  %v194_v5 = vld [vmem:[#allocation5 + $0xa8] sm:$0xff]  ;;  %v195_v9 = vld [vmem:[#allocation5 + $0xb0] sm:$0xff] }
  0xc4   :  { %v1751_v27 = vpop.permute.xlu1 %142  ;;  %v141_v28 = vpop.permute.xlu0 %140  ;;  %v136_v55 = vadd.f32 %v132_v22, %v110_v24  ;;  %v138_v3 = vadd.f32 %v134_v46, %v112_v51  ;;  %v139_v4 = vadd.f32 %v135_v47, %v113_v54  ;;  %v1838_v24 = vshrl.u32 %v73_v32, 7  ;;  %v247_v58 = vld [vmem:[#allocation5 + $0xf0] sm:$0xff] }
  0xc5   :  { %v151_v25 = vsel %vm148_vm3, %v141_v28, %v1751_v27 }
  0xc6   :  { %v159_v56 = vmul.f32 %v155_v42, %v151_v25  ;;  %v219_v25 = vld [vmem:[#allocation5 + $0xc0] sm:$0xff] }
  0xc8   :  { %v147_v30 = vpop.permute.xlu1 %146  ;;  %v145_v31 = vpop.permute.xlu0 %144 }
  0xc9   :  { %v152_v18 = vsel %vm148_vm3, %v147_v30, %v141_v28  ;;  %v149_v26 = vsel %vm148_vm3, %v145_v31, %v147_v30  ;;  %v150_v44 = vsel %vm148_vm3, %v1751_v27, %v145_v31  ;;  %v171_v27 = vmul.f32 %v167_v49, %v1664_v6 }
  0xca   :  { %v158_v48 = vmul.f32 %v154_v17, %v152_v18  ;;  %v160_v28 = vmul.f32 %v156_v43, %v150_v44  ;;  %v161_v57 = vmul.f32 %v157_v23, %v149_v26  ;;  %v137_v31 = vadd.f32 %v133_v45, %v111_v50  ;;  %v193_v17 = vld [vmem:[#allocation5 + $0xa0] sm:$0xff]  ;;  %v222_v43 = vld [vmem:[#allocation5 + $0xd8] sm:$0xff]  ;;  %v220_v23 = vld [vmem:[#allocation5 + $0xc8] sm:$0xff] }
  0xcc   :  { %v1754_v33 = vpop.permute.xlu1 %181  ;;  %v1756_v34 = vpop.permute.xlu0 %179  ;;  %v162_v7 = vadd.f32 %v158_v48, %v136_v55  ;;  %v163_v10 = vadd.f32 %v159_v56, %v137_v31  ;;  %v164_v15 = vadd.f32 %v160_v28, %v138_v3  ;;  %v165_v16 = vadd.f32 %v161_v57, %v139_v4  ;;  %v245_v55 = vld [vmem:[#allocation5 + $0xe0] sm:$0xff]  ;;  %v246_v57 = vld [vmem:[#allocation5 + $0xe8] sm:$0xff] }
  0xcd   :  { %v190_v6 = vsel %vm187_vm4, %v1756_v34, %v1754_v33 }
  0xce   :  { %v175_v42 = vadd.f32 %v171_v27, %v162_v7  ;;  %v197_v26 = vmul.f32 %v193_v17, %v190_v6  ;;  %v178_v47 = vadd.f32 %v174_v62, %v165_v16  ;;  %v176_v48 = vadd.f32 %v172_v63, %v163_v10  ;;  %v271_v7 = vld [vmem:[#allocation5 + $0x100] sm:$0xff]  ;;  %v274_v63 = vld [vmem:[#allocation5 + $0x118] sm:$0xff]  ;;  %v273_v10 = vld [vmem:[#allocation5 + $0x110] sm:$0xff] }
  0xcf   :  { %v177_v49 = vadd.f32 %v173_v2, %v164_v15  ;;  %v272_v2 = vld [vmem:[#allocation5 + $0x108] sm:$0xff] }
  0xd0   :  { %v1761_v36 = vpop.permute.xlu1 %185  ;;  %v1763_v37 = vpop.permute.xlu0 %183  ;;  %v201_v27 = vadd.f32 %v197_v26, %v175_v42  ;;  %v1885_v26 = vsub.s32 2, %v1838_v24 }
  0xd1   :  { %v191_v8 = vsel %vm187_vm4, %v1761_v36, %v1756_v34  ;;  %v188_v21 = vsel %vm187_vm4, %v1763_v37, %v1761_v36  ;;  %v189_v22 = vsel %vm187_vm4, %v1754_v33, %v1763_v37  ;;  %v221_v33 = vld [vmem:[#allocation5 + $0xd0] sm:$0xff] }
  0xd2   :  { %v200_v44 = vmul.f32 %v196_v20, %v191_v8  ;;  %v198_v45 = vmul.f32 %v194_v5, %v189_v22  ;;  %v199_v46 = vmul.f32 %v195_v9, %v188_v21 }
  0xd4   :  { %v1767_v38 = vpop.permute.xlu1 %207  ;;  %v1769_v39 = vpop.permute.xlu0 %205  ;;  %v204_v31 = vadd.f32 %v200_v44, %v178_v47  ;;  %v202_v3 = vadd.f32 %v198_v45, %v176_v48  ;;  %v203_v4 = vadd.f32 %v199_v46, %v177_v49  ;;  %v1888_v44 = vsub.s32 3, %v1838_v24 }
  0xd5   :  { %v216_v34 = vsel %vm213_vm5, %v1769_v39, %v1767_v38 }
  0xd8   :  { %v1785_v52 = vpop.permute.xlu1 %211  ;;  %v1787_v53 = vpop.permute.xlu0 %209 }
  0xd9   :  { %v217_v36 = vsel %vm213_vm5, %v1785_v52, %v1769_v39  ;;  %v214_v32 = vsel %vm213_vm5, %v1787_v53, %v1785_v52  ;;  %v215_v37 = vsel %vm213_vm5, %v1767_v38, %v1787_v53  ;;  %v223_v39 = vmul.f32 %v219_v25, %v216_v34  ;;  %v248_v53 = vld [vmem:[#allocation5 + $0xf8] sm:$0xff] }
  0xda   :  { %v226_v50 = vmul.f32 %v222_v43, %v217_v36  ;;  %v224_v51 = vmul.f32 %v220_v23, %v215_v37  ;;  %v225_v54 = vmul.f32 %v221_v33, %v214_v32  ;;  %v1879_v36 = vsub.s32 1, %v1838_v24 }
  0xdb   :  { %v227_v6 = vadd.f32 %v223_v39, %v201_v27  ;;  %v1882_v37 = vsub.s32 0, %v1838_v24 }
  0xdc   :  { %v1803_v40 = vpop.permute.xlu1 %233  ;;  %v1805_v41 = vpop.permute.xlu0 %231  ;;  %v230_v20 = vadd.f32 %v226_v50, %v204_v31  ;;  %v228_v8 = vadd.f32 %v224_v51, %v202_v3  ;;  %v229_v5 = vadd.f32 %v225_v54, %v203_v4 }
  0xdd   :  { %v242_v38 = vsel %vm239_vm6, %v1805_v41, %v1803_v40 }
  0xe0   :  { %v238_v30 = vpop.permute.xlu1 %237  ;;  %v236_v61 = vpop.permute.xlu0 %235 }
  0xe1   :  { %v243_v28 = vsel %vm239_vm6, %v238_v30, %v1805_v41  ;;  %v240_v59 = vsel %vm239_vm6, %v236_v61, %v238_v30  ;;  %v241_v60 = vsel %vm239_vm6, %v1803_v40, %v236_v61  ;;  %v249_v61 = vmul.f32 %v245_v55, %v242_v38 }
  0xe2   :  { %v252_v15 = vmul.f32 %v248_v53, %v243_v28  ;;  %v250_v16 = vmul.f32 %v246_v57, %v241_v60  ;;  %v251_v17 = vmul.f32 %v247_v58, %v240_v59 }
  0xe3   :  { %v253_v42 = vadd.f32 %v249_v61, %v227_v6 }
  0xe4   :  { %v260_v18 = vpop.permute.xlu1 %259  ;;  %v258_v19 = vpop.permute.xlu0 %257  ;;  %v256_v25 = vadd.f32 %v252_v15, %v230_v20  ;;  %v254_v34 = vadd.f32 %v250_v16, %v228_v8  ;;  %v255_v43 = vadd.f32 %v251_v17, %v229_v5 }
  0xe5   :  { %v268_v62 = vsel %vm265_vm7, %v258_v19, %v260_v18 }
  0xe6   :  { %v275_v9 = vmul.f32 %v271_v7, %v268_v62 }
  0xe8   :  { %v264_v52 = vpop.permute.xlu1 %263  ;;  %v262_v56 = vpop.permute.xlu0 %261 }
  0xe9   :  { %v269_v41 = vsel %vm265_vm7, %v264_v52, %v258_v19  ;;  %v266_v30 = vsel %vm265_vm7, %v262_v56, %v264_v52  ;;  %v267_v40 = vsel %vm265_vm7, %v260_v18, %v262_v56  ;;  %v279_v18 = vadd.f32 %v275_v9, %v253_v42 }
  0xea   :  { %v278_v21 = vmul.f32 %v274_v63, %v269_v41  ;;  %v276_v22 = vmul.f32 %v272_v2, %v267_v40  ;;  %v277_v19 = vmul.f32 %v273_v10, %v266_v30 }
  0xeb   :  { %v316_v45 = vrot.slane %v279_v18, %v1879_v36  ;;  %v292_v55 = vrot.slane %v279_v18, %v1882_v37  ;;  %v344_v60 = vrot.slane %v279_v18, %v1885_v26  ;;  %v372_v3 = vrot.slane %v279_v18, %v1888_v44 }
  0xec   :  { %v282_v23 = vadd.f32 %v278_v21, %v256_v25  ;;  %v280_v33 = vadd.f32 %v276_v22, %v254_v34  ;;  %v281_v32 = vadd.f32 %v277_v19, %v255_v43 }
  0xee   :  { %v320_v46 = vrot.slane %v280_v33, %v1879_v36  ;;  %v324_v47 = vrot.slane %v281_v32, %v1879_v36  ;;  %v328_v48 = vrot.slane %v282_v23, %v1879_v36  ;;  %v296_v39 = vrot.slane %v280_v33, %v1882_v37 }
  0xef   :  { %v300_v50 = vrot.slane %v281_v32, %v1882_v37  ;;  %v304_v51 = vrot.slane %v282_v23, %v1882_v37  ;;  %v348_v27 = vrot.slane %v280_v33, %v1885_v26  ;;  %v352_v31 = vrot.slane %v281_v32, %v1885_v26 }
  0xf0   :  { %v356_v4 = vrot.slane %v282_v23, %v1885_v26  ;;  %v376_v7 = vrot.slane %v280_v33, %v1888_v44  ;;  %v380_v62 = vrot.slane %v281_v32, %v1888_v44  ;;  %v384_v63 = vrot.slane %v282_v23, %v1888_v44 }
  0xf9   :  { %v311_v49 = vpop.permute.xlu1 %310  ;;  %v287_v54 = vpop.permute.xlu0 %286 }
  0xfa   :  { %v329_v52 = vmul.f32 %v316_v45, %v311_v49  ;;  %v330_v56 = vmul.f32 %v320_v46, %v311_v49  ;;  %v331_v38 = vmul.f32 %v324_v47, %v311_v49  ;;  %v332_v53 = vmul.f32 %v328_v48, %v311_v49 }
  0xfb   :  { %v305_v28 = vmul.f32 %v292_v55, %v287_v54  ;;  %v306_v57 = vmul.f32 %v296_v39, %v287_v54  ;;  %v307_v58 = vmul.f32 %v300_v50, %v287_v54  ;;  %v308_v59 = vmul.f32 %v304_v51, %v287_v54  ;;  %v1983_v55 = vld [vmem:[#allocation7 + $0x10] sm:$0xff] }
  0xfc   :  { %v1595_v50 = vmov 7   ;;  %v1596_v51 = vmov 5   ;;  %v1597_v54 = vmov 6  }
  0xfd   :  { %v333_v41 = vadd.f32 %v329_v52, %v305_v28  ;;  %v334_v2 = vadd.f32 %v330_v56, %v306_v57  ;;  %v335_v10 = vadd.f32 %v331_v38, %v307_v58  ;;  %v336_v30 = vadd.f32 %v332_v53, %v308_v59 }
  0xfe   :  { %v339_v40 = vpop.permute.xlu1 %338  ;;  %v367_v61 = vpop.permute.xlu0 %366 }
  0xff   :  { %v357_v15 = vmul.f32 %v344_v60, %v339_v40  ;;  %v358_v16 = vmul.f32 %v348_v27, %v339_v40  ;;  %v359_v17 = vmul.f32 %v352_v31, %v339_v40  ;;  %v360_v6 = vmul.f32 %v356_v4, %v339_v40 }
 0x100   :  { %v385_v20 = vmul.f32 %v372_v3, %v367_v61  ;;  %v386_v8 = vmul.f32 %v376_v7, %v367_v61  ;;  %v387_v5 = vmul.f32 %v380_v62, %v367_v61  ;;  %v388_v9 = vmul.f32 %v384_v63, %v367_v61 }
 0x101   :  { %v361_v21 = vadd.f32 %v357_v15, %v333_v41  ;;  %v362_v22 = vadd.f32 %v358_v16, %v334_v2  ;;  %v363_v19 = vadd.f32 %v359_v17, %v335_v10  ;;  %v364_v42 = vadd.f32 %v360_v6, %v336_v30  ;;  %v421_v2 = vld [vmem:[#allocation5 + $0x128] sm:$0xff]  ;;  %v441_v30 = vld [vmem:[#allocation5 + $0x140] sm:$0xff]  ;;  %v444_v6 = vld [vmem:[#allocation5 + $0x158] sm:$0xff] }
 0x102   :  { %v420_v16 = vld [vmem:[#allocation5 + $0x120] sm:$0xff] }
 0x103   :  { %v397_v25 = vpop.permute.xlu1 %396  ;;  %v389_v34 = vadd.f32 %v385_v20, %v361_v21  ;;  %v390_v43 = vadd.f32 %v386_v8, %v362_v22  ;;  %v391_v18 = vadd.f32 %v387_v5, %v363_v19  ;;  %v392_v23 = vadd.f32 %v388_v9, %v364_v42  ;;  %v466_v8 = vld [vmem:[#allocation5 + $0x160] sm:$0xff]  ;;  %v442_v21 = vld [vmem:[#allocation5 + $0x148] sm:$0xff]  ;;  %v443_v42 = vld [vmem:[#allocation5 + $0x150] sm:$0xff] }
 0x105   :  { %v399_v33 = vadd.f32 %v397_v25, %v389_v34  ;;  %v400_v32 = vadd.f32 %v397_v25, %v390_v43  ;;  %v401_v45 = vadd.f32 %v397_v25, %v391_v18  ;;  %v402_v46 = vadd.f32 %v397_v25, %v392_v23  ;;  %v423_v34 = vld [vmem:[#allocation5 + $0x138] sm:$0xff] }
 0x106   :  { %v469_v23 = vld [vmem:[#allocation5 + $0x178] sm:$0xff] }
 0x107   :  { %v1906_v47 = vmax.f32 %v399_v33, 0.0  ;;  %v1908_v48 = vmax.f32 %v400_v32, 0.0  ;;  %v1914_v49 = vmax.f32 %v401_v45, 0.0  ;;  %v1916_v39 = vmax.f32 %v402_v46, 0.0  ;;  %v491_v32 = vld [vmem:[#allocation5 + $0x180] sm:$0xff] }
 0x109   :  { %409 = vrot.lane.b32.xlu0 %v1908_v48, %s1584_s27  ;;  %407 = vrot.lane.b32.xlu1 %v1906_v47, %s1584_s27 }
 0x10d   :  { %413 = vrot.lane.b32.xlu0 %v1916_v39, %s1584_s27  ;;  %411 = vrot.lane.b32.xlu1 %v1914_v49, %s1584_s27 }
 0x111   :  { %430 = vrot.lane.b32.xlu0 %v1908_v48, %s1585_s2  ;;  %428 = vrot.lane.b32.xlu1 %v1906_v47, %s1585_s2 }
 0x115   :  { %434 = vrot.lane.b32.xlu0 %v1916_v39, %s1585_s2  ;;  %432 = vrot.lane.b32.xlu1 %v1914_v49, %s1585_s2 }
 0x119   :  { %455 = vrot.lane.b32.xlu0 %v1908_v48, %s1586_s28  ;;  %453 = vrot.lane.b32.xlu1 %v1906_v47, %s1586_s28 }
 0x11d   :  { %459 = vrot.lane.b32.xlu0 %v1916_v39, %s1586_s28  ;;  %457 = vrot.lane.b32.xlu1 %v1914_v49, %s1586_s28 }
 0x121   :  { %480 = vrot.lane.b32.xlu0 %v1908_v48, %s1587_s29  ;;  %478 = vrot.lane.b32.xlu1 %v1906_v47, %s1587_s29 }
 0x125   :  { %484 = vrot.lane.b32.xlu0 %v1916_v39, %s1587_s29  ;;  %482 = vrot.lane.b32.xlu1 %v1914_v49, %s1587_s29 }
 0x129   :  { %518 = vrot.lane.b32.xlu0 %v1908_v48, %s1588_s30  ;;  %516 = vrot.lane.b32.xlu1 %v1906_v47, %s1588_s30 }
 0x12d   :  { %522 = vrot.lane.b32.xlu0 %v1916_v39, %s1588_s30  ;;  %520 = vrot.lane.b32.xlu1 %v1914_v49, %s1588_s30 }
 0x131   :  { %543 = vrot.lane.b32.xlu0 %v1908_v48, %s1589_s5  ;;  %541 = vrot.lane.b32.xlu1 %v1906_v47, %s1589_s5 }
 0x135   :  { %547 = vrot.lane.b32.xlu0 %v1916_v39, %s1589_s5  ;;  %545 = vrot.lane.b32.xlu1 %v1914_v49, %s1589_s5 }
 0x139   :  { %568 = vrot.lane.b32.xlu0 %v1908_v48, %s1590_s6  ;;  %566 = vrot.lane.b32.xlu1 %v1906_v47, %s1590_s6 }
 0x13d   :  { %572 = vrot.lane.b32.xlu0 %v1916_v39, %s1590_s6  ;;  %570 = vrot.lane.b32.xlu1 %v1914_v49, %s1590_s6 }
 0x141   :  { %593 = vrot.lane.b32.xlu0 %v1908_v48, %s1591_s7  ;;  %591 = vrot.lane.b32.xlu1 %v1906_v47, %s1591_s7 }
 0x145   :  { %597 = vrot.lane.b32.xlu0 %v1916_v39, %s1591_s7  ;;  %595 = vrot.lane.b32.xlu1 %v1914_v49, %s1591_s7 }
 0x149   :  { %728 = vperm.xlu0 %1458, %v1742_v14   ;;  %700 = vperm.xlu1 %1457, %v1742_v14  }
 0x14d   :  { %1461 = vset.pattern.permute.xlu0 %v1595_v50  ;;  %1459 = vset.pattern.permute.xlu1 %v1596_v51 }
 0x14e   :  { %812 = vperm.xlu0 %1461, %v1742_v14   ;;  %756 = vperm.xlu1 %1459, %v1742_v14  }
 0x152   :  { %1460 = vset.pattern.permute.xlu1 %v1597_v54  ;;  %1466 = vset.pattern.permute.xlu0 %v1594_v29  ;;  %v2007_v29 = vpop.permute.xlu0 %644 }
 0x153   :  { %784 = vperm.xlu1 %1460, %v1742_v14   ;;  %1172 = vperm.xlu0 %1466, %v1983_v55  }
 0x157   :  { %1462 = vset.pattern.permute.xlu1 %v1582_v0  ;;  %1467 = vset.pattern.permute.xlu0 %v1582_v0  ;;  %v1999_v0 = vld [vmem:[#allocation7 + $0x18] sm:$0xff] }
 0x158   :  { %840 = vperm.xlu1 %1462, %v1739_v13   ;;  %1088 = vperm.xlu0 %1467, %v1983_v55   ;;  %v2002_v13 = vpop.permute.xlu1 %620 }
 0x15c   :  { %1463 = vset.pattern.permute.xlu1 %v1583_v1  ;;  %v2005_v14 = vpop.permute.xlu1 %672 }
 0x15d   :  { %1064 = vperm.xlu1 %1463, %v1983_v55  }
 0x161   :  { %1464 = vset.pattern.permute.xlu1 %v1592_v11 }
 0x162   :  { %1116 = vperm.xlu1 %1464, %v1983_v55  }
 0x166   :  { %1465 = vset.pattern.permute.xlu1 %v1593_v12 }
 0x167   :  { %1144 = vperm.xlu1 %1465, %v1983_v55  }
 0x16b   :  { %1468 = vset.pattern.permute.xlu1 %v1596_v51  ;;  %v422_v51 = vld [vmem:[#allocation5 + $0x130] sm:$0xff] }
 0x16c   :  { %1200 = vperm.xlu1 %1468, %v1983_v55  }
 0x170   :  { %1469 = vset.pattern.permute.xlu1 %v1583_v1 }
 0x171   :  { %1287 = vperm.xlu1 %1469, %v1999_v0  }
 0x175   :  { %1470 = vset.pattern.permute.xlu1 %v1597_v54 }
 0x17b   :  { %v410_v52 = vpop.permute.xlu0 %409  ;;  %v408_v56 = vpop.permute.xlu1 %407 }
 0x17c   :  { %v417_v10 = vsel %vm75_vm0, %v408_v56, %v410_v52 }
 0x17d   :  { %v425_v9 = vmul.f32 %v421_v2, %v417_v10  ;;  %v494_v2 = vld [vmem:[#allocation5 + $0x198] sm:$0xff] }
 0x17f   :  { %v414_v38 = vpop.permute.xlu0 %413  ;;  %v412_v53 = vpop.permute.xlu1 %411 }
 0x180   :  { %v418_v17 = vsel %vm75_vm0, %v414_v38, %v408_v56  ;;  %v415_v43 = vsel %vm75_vm0, %v412_v53, %v414_v38  ;;  %v416_v18 = vsel %vm75_vm0, %v410_v52, %v412_v53  ;;  %v467_v56 = vld [vmem:[#allocation5 + $0x168] sm:$0xff]  ;;  %v468_v53 = vld [vmem:[#allocation5 + $0x170] sm:$0xff] }
 0x181   :  { %v424_v46 = vmul.f32 %v420_v16, %v418_v17 }
 0x183   :  { %v431_v28 = vpop.permute.xlu0 %430  ;;  %v429_v57 = vpop.permute.xlu1 %428 }
 0x184   :  { %v438_v22 = vsel %vm96_vm1, %v429_v57, %v431_v28 }
 0x187   :  { %v435_v58 = vpop.permute.xlu0 %434  ;;  %v433_v59 = vpop.permute.xlu1 %432 }
 0x188   :  { %v439_v40 = vsel %vm96_vm1, %v435_v58, %v429_v57  ;;  %v436_v20 = vsel %vm96_vm1, %v433_v59, %v435_v58  ;;  %v437_v25 = vsel %vm96_vm1, %v431_v28, %v433_v59  ;;  %v446_v59 = vmul.f32 %v442_v21, %v438_v22 }
 0x189   :  { %v445_v19 = vmul.f32 %v441_v30, %v439_v40  ;;  %v448_v54 = vmul.f32 %v444_v6, %v436_v20  ;;  %v447_v52 = vmul.f32 %v443_v42, %v437_v25  ;;  %v427_v30 = vmul.f32 %v423_v34, %v415_v43  ;;  %v504_v25 = vld [vmem:[#allocation5 + $0x1a0] sm:$0xff] }
 0x18a   :  { %v426_v6 = vmul.f32 %v422_v51, %v416_v18  ;;  %v450_v43 = vadd.f32 %v446_v59, %v425_v9 }
 0x18b   :  { %v456_v60 = vpop.permute.xlu0 %455  ;;  %v454_v27 = vpop.permute.xlu1 %453  ;;  %v449_v40 = vadd.f32 %v445_v19, %v424_v46  ;;  %v452_v22 = vadd.f32 %v448_v54, %v427_v30  ;;  %v505_v46 = vld [vmem:[#allocation5 + $0x1a8] sm:$0xff] }
 0x18c   :  { %v463_v28 = vsel %vm122_vm2, %v454_v27, %v456_v60 }
 0x18d   :  { %v471_v20 = vmul.f32 %v467_v56, %v463_v28  ;;  %v508_v56 = vmul.f32 %v504_v25, %v1906_v47  ;;  %v529_v28 = vld [vmem:[#allocation5 + $0x1c0] sm:$0xff]  ;;  %v509_v47 = vmul.f32 %v505_v46, %v1908_v48  ;;  %v556_v25 = vld [vmem:[#allocation5 + $0x1f0] sm:$0xff] }
 0x18f   :  { %v460_v1 = vpop.permute.xlu0 %459  ;;  %v458_v31 = vpop.permute.xlu1 %457  ;;  %v475_v51 = vadd.f32 %v471_v20, %v450_v43  ;;  %v557_v20 = vld [vmem:[#allocation5 + $0x1f8] sm:$0xff] }
 0x190   :  { %v464_v5 = vsel %vm122_vm2, %v460_v1, %v454_v27  ;;  %v461_v33 = vsel %vm122_vm2, %v458_v31, %v460_v1  ;;  %v462_v1 = vsel %vm122_vm2, %v456_v60, %v458_v31  ;;  %v492_v27 = vld [vmem:[#allocation5 + $0x188] sm:$0xff]  ;;  %v582_v43 = vld [vmem:[#allocation5 + $0x218] sm:$0xff] }
 0x191   :  { %v470_v57 = vmul.f32 %v466_v8, %v464_v5  ;;  %v473_v16 = vmul.f32 %v469_v23, %v461_v33  ;;  %v493_v5 = vld [vmem:[#allocation5 + $0x190] sm:$0xff]  ;;  %v472_v31 = vmul.f32 %v468_v53, %v462_v1  ;;  %v451_v23 = vadd.f32 %v447_v52, %v426_v6  ;;  %v530_v1 = vld [vmem:[#allocation5 + $0x1c8] sm:$0xff] }
 0x193   :  { %v481_v3 = vpop.permute.xlu0 %480  ;;  %v479_v4 = vpop.permute.xlu1 %478  ;;  %v474_v60 = vadd.f32 %v470_v57, %v449_v40  ;;  %v477_v18 = vadd.f32 %v473_v16, %v452_v22  ;;  %v532_v57 = vld [vmem:[#allocation5 + $0x1d8] sm:$0xff] }
 0x194   :  { %v488_v8 = vsel %vm148_vm3, %v479_v4, %v481_v3 }
 0x195   :  { %v496_v33 = vmul.f32 %v492_v27, %v488_v8  ;;  %v555_v8 = vld [vmem:[#allocation5 + $0x1e8] sm:$0xff] }
 0x197   :  { %v485_v7 = vpop.permute.xlu0 %484  ;;  %v483_v62 = vpop.permute.xlu1 %482  ;;  %v500_v40 = vadd.f32 %v496_v33, %v475_v51 }
 0x198   :  { %v489_v45 = vsel %vm148_vm3, %v485_v7, %v479_v4  ;;  %v486_v10 = vsel %vm148_vm3, %v483_v62, %v485_v7  ;;  %v487_v21 = vsel %vm148_vm3, %v481_v3, %v483_v62  ;;  %v507_v7 = vld [vmem:[#allocation5 + $0x1b8] sm:$0xff]  ;;  %v506_v4 = vld [vmem:[#allocation5 + $0x1b0] sm:$0xff]  ;;  %v476_v62 = vadd.f32 %v472_v31, %v451_v23  ;;  %v580_v23 = vld [vmem:[#allocation5 + $0x208] sm:$0xff] }
 0x199   :  { %v495_v17 = vmul.f32 %v491_v32, %v489_v45  ;;  %v498_v42 = vmul.f32 %v494_v2, %v486_v10  ;;  %v497_v45 = vmul.f32 %v493_v5, %v487_v21  ;;  %v511_v3 = vmul.f32 %v507_v7, %v1916_v39  ;;  %v531_v2 = vld [vmem:[#allocation5 + $0x1d0] sm:$0xff] }
 0x19a   :  { %v510_v39 = vmul.f32 %v506_v4, %v1914_v49 }
 0x19b   :  { %v2009_v63 = vpop.permute.xlu0 %518  ;;  %v2011_v41 = vpop.permute.xlu1 %516  ;;  %v499_v32 = vadd.f32 %v495_v17, %v474_v60  ;;  %v502_v54 = vadd.f32 %v498_v42, %v477_v18  ;;  %v554_v17 = vld [vmem:[#allocation5 + $0x1e0] sm:$0xff]  ;;  %v513_v18 = vadd.f32 %v509_v47, %v500_v40  ;;  %v605_v40 = vld [vmem:[#allocation5 + $0x228] sm:$0xff] }
 0x19c   :  { %v526_v9 = vsel %vm187_vm4, %v2011_v41, %v2009_v63 }
 0x19d   :  { %v512_v16 = vadd.f32 %v508_v56, %v499_v32  ;;  %v533_v49 = vmul.f32 %v529_v28, %v526_v9  ;;  %v515_v5 = vadd.f32 %v511_v3, %v502_v54  ;;  %v581_v56 = vld [vmem:[#allocation5 + $0x210] sm:$0xff] }
 0x19f   :  { %v2017_v61 = vpop.permute.xlu0 %522  ;;  %v2019_v15 = vpop.permute.xlu1 %520  ;;  %v537_v46 = vadd.f32 %v533_v49, %v512_v16 }
 0x1a0   :  { %v527_v59 = vsel %vm187_vm4, %v2017_v61, %v2011_v41  ;;  %v524_v10 = vsel %vm187_vm4, %v2019_v15, %v2017_v61  ;;  %v525_v30 = vsel %vm187_vm4, %v2009_v63, %v2019_v15  ;;  %v501_v41 = vadd.f32 %v497_v45, %v476_v62  ;;  %v579_v15 = vld [vmem:[#allocation5 + $0x200] sm:$0xff] }
 0x1a1   :  { %v536_v6 = vmul.f32 %v532_v57, %v527_v59  ;;  %v534_v21 = vmul.f32 %v530_v1, %v525_v30  ;;  %v535_v63 = vmul.f32 %v531_v2, %v524_v10  ;;  %v607_v30 = vld [vmem:[#allocation5 + $0x238] sm:$0xff] }
 0x1a2   :  { %v514_v33 = vadd.f32 %v510_v39, %v501_v41  ;;  %v606_v41 = vld [vmem:[#allocation5 + $0x230] sm:$0xff] }
 0x1a3   :  { %v544_v38 = vpop.permute.xlu0 %543  ;;  %v542_v58 = vpop.permute.xlu1 %541  ;;  %v540_v4 = vadd.f32 %v536_v6, %v515_v5 }
 0x1a4   :  { %v551_v48 = vsel %vm213_vm5, %v542_v58, %v544_v38  ;;  %v539_v59 = vadd.f32 %v535_v63, %v514_v33 }
 0x1a5   :  { %v558_v42 = vmul.f32 %v554_v17, %v551_v48 }
 0x1a7   :  { %v548_v34 = vpop.permute.xlu0 %547  ;;  %v546_v19 = vpop.permute.xlu1 %545 }
 0x1a8   :  { %v552_v27 = vsel %vm213_vm5, %v548_v34, %v542_v58  ;;  %v550_v61 = vsel %vm213_vm5, %v544_v38, %v546_v19  ;;  %v549_v7 = vsel %vm213_vm5, %v546_v19, %v548_v34  ;;  %v604_v34 = vld [vmem:[#allocation5 + $0x220] sm:$0xff]  ;;  %v538_v19 = vadd.f32 %v534_v21, %v513_v18 }
 0x1a9   :  { %v561_v32 = vmul.f32 %v557_v20, %v552_v27  ;;  %v559_v45 = vmul.f32 %v555_v8, %v550_v61  ;;  %v560_v62 = vmul.f32 %v556_v25, %v549_v7 }
 0x1ab   :  { %v569_v52 = vpop.permute.xlu0 %568  ;;  %v567_v53 = vpop.permute.xlu1 %566  ;;  %v565_v47 = vadd.f32 %v561_v32, %v540_v4  ;;  %v563_v39 = vadd.f32 %v559_v45, %v538_v19  ;;  %v564_v16 = vadd.f32 %v560_v62, %v539_v59  ;;  %v2131_v62 = vsub.s32 7, %v1838_v24 }
 0x1ac   :  { %v576_v22 = vsel %vm239_vm6, %v567_v53, %v569_v52 }
 0x1ad   :  { %v583_v51 = vmul.f32 %v579_v15, %v576_v22  ;;  %2627 = vst [vmem:[#allocation13_spill] sm:$0xff] %v2131_v62 }
 0x1af   :  { %v573_v60 = vpop.permute.xlu0 %572  ;;  %v571_v31 = vpop.permute.xlu1 %570 }
 0x1b0   :  { %v577_v58 = vsel %vm239_vm6, %v573_v60, %v567_v53  ;;  %v575_v38 = vsel %vm239_vm6, %v569_v52, %v571_v31  ;;  %v574_v3 = vsel %vm239_vm6, %v571_v31, %v573_v60  ;;  %v562_v52 = vadd.f32 %v558_v42, %v537_v46 }
 0x1b1   :  { %v586_v54 = vmul.f32 %v582_v43, %v577_v58  ;;  %v584_v28 = vmul.f32 %v580_v23, %v575_v38  ;;  %v585_v1 = vmul.f32 %v581_v56, %v574_v3 }
 0x1b2   :  { %v587_v10 = vadd.f32 %v583_v51, %v562_v52 }
 0x1b3   :  { %v594_v9 = vpop.permute.xlu0 %593  ;;  %v592_v57 = vpop.permute.xlu1 %591  ;;  %v590_v17 = vadd.f32 %v586_v54, %v565_v47  ;;  %v588_v48 = vadd.f32 %v584_v28, %v563_v39  ;;  %v589_v5 = vadd.f32 %v585_v1, %v564_v16 }
 0x1b4   :  { %v601_v53 = vsel %vm265_vm7, %v592_v57, %v594_v9 }
 0x1b5   :  { %v608_v2 = vmul.f32 %v604_v34, %v601_v53  ;;  %v2126_v34 = vsub.s32 4, %v1838_v24 }
 0x1b7   :  { %v598_v49 = vpop.permute.xlu0 %597  ;;  %v596_v6 = vpop.permute.xlu1 %595  ;;  %v2087_v20 = vadd.f32 %v608_v2, %v587_v10  ;;  %2626 = vst [vmem:[#allocation12_spill] sm:$0xff] %v2126_v34 }
 0x1b8   :  { %v602_v27 = vsel %vm265_vm7, %v598_v49, %v592_v57  ;;  %v599_v8 = vsel %vm265_vm7, %v596_v6, %v598_v49  ;;  %v600_v61 = vsel %vm265_vm7, %v594_v9, %v596_v6  ;;  %v2143_v9 = vsub.s32 6, %v1838_v24 }
 0x1b9   :  { %v611_v21 = vmul.f32 %v607_v30, %v602_v27  ;;  %v609_v63 = vmul.f32 %v605_v40, %v600_v61  ;;  %v610_v15 = vmul.f32 %v606_v41, %v599_v8  ;;  %v626_v42 = vrot.slane %v2087_v20, %v1882_v37 }
 0x1ba   :  { %v650_v25 = vrot.slane %v2087_v20, %v1879_v36  ;;  %v678_v19 = vrot.slane %v2087_v20, %v1885_v26  ;;  %v734_v47 = vrot.slane %v2087_v20, %v2126_v34  ;;  %v706_v1 = vrot.slane %v2087_v20, %v1888_v44 }
 0x1bb   :  { %v2095_v22 = vadd.f32 %v611_v21, %v590_v17  ;;  %v2097_v60 = vadd.f32 %v609_v63, %v588_v48  ;;  %v2099_v31 = vadd.f32 %v610_v15, %v589_v5  ;;  %v639_v45 = vmul.f32 %v626_v42, %v2002_v13 }
 0x1bc   :  { %v663_v46 = vmul.f32 %v650_v25, %v2007_v29  ;;  %v691_v39 = vmul.f32 %v678_v19, %v2005_v14  ;;  %v818_v2 = vrot.slane %v2087_v20, %v2131_v62 }
 0x1bd   :  { %v630_v7 = vrot.slane %v2097_v60, %v1882_v37  ;;  %v634_v43 = vrot.slane %v2099_v31, %v1882_v37  ;;  %v638_v58 = vrot.slane %v2095_v22, %v1882_v37  ;;  %v654_v23 = vrot.slane %v2097_v60, %v1879_v36 }
 0x1be   :  { %v658_v38 = vrot.slane %v2099_v31, %v1879_v36  ;;  %v662_v18 = vrot.slane %v2095_v22, %v1879_v36  ;;  %v682_v54 = vrot.slane %v2097_v60, %v1885_v26  ;;  %v690_v28 = vrot.slane %v2095_v22, %v1885_v26 }
 0x1bf   :  { %v640_v33 = vmul.f32 %v630_v7, %v2002_v13  ;;  %v641_v32 = vmul.f32 %v634_v43, %v2002_v13  ;;  %v642_v4 = vmul.f32 %v638_v58, %v2002_v13  ;;  %v664_v51 = vmul.f32 %v654_v23, %v2007_v29 }
 0x1c0   :  { %v665_v56 = vmul.f32 %v658_v38, %v2007_v29  ;;  %v666_v3 = vmul.f32 %v662_v18, %v2007_v29  ;;  %v686_v13 = vrot.slane %v2099_v31, %v1885_v26  ;;  %v2140_v29 = vsub.s32 5, %v1838_v24 }
 0x1c1   :  { %v668_v57 = vadd.f32 %v664_v51, %v640_v33  ;;  %v667_v53 = vadd.f32 %v663_v46, %v639_v45  ;;  %v692_v10 = vmul.f32 %v682_v54, %v2005_v14  ;;  %v694_v30 = vmul.f32 %v690_v28, %v2005_v14 }
 0x1c2   :  { %2628 = vst [vmem:[#allocation14_spill] sm:$0xff] %v2140_v29  ;;  %v669_v59 = vadd.f32 %v665_v56, %v641_v32  ;;  %v670_v52 = vadd.f32 %v666_v3, %v642_v4  ;;  %v693_v24 = vmul.f32 %v686_v13, %v2005_v14  ;;  %v762_v40 = vrot.slane %v2087_v20, %v2140_v29 }
 0x1c3   :  { %v738_v41 = vrot.slane %v2097_v60, %v2126_v34  ;;  %v710_v16 = vrot.slane %v2097_v60, %v1888_v44  ;;  %v714_v17 = vrot.slane %v2099_v31, %v1888_v44  ;;  %v718_v48 = vrot.slane %v2095_v22, %v1888_v44 }
 0x1c4   :  { %v696_v6 = vadd.f32 %v692_v10, %v668_v57  ;;  %v697_v27 = vadd.f32 %v693_v24, %v669_v59  ;;  %v698_v8 = vadd.f32 %v694_v30, %v670_v52  ;;  %v695_v14 = vadd.f32 %v691_v39, %v667_v53 }
 0x1c5   :  { %v742_v42 = vrot.slane %v2099_v31, %v2126_v34  ;;  %v746_v25 = vrot.slane %v2095_v22, %v2126_v34  ;;  %v822_v7 = vrot.slane %v2097_v60, %v2131_v62  ;;  %v826_v43 = vrot.slane %v2099_v31, %v2131_v62  ;;  %v911_v34 = vld [vmem:[#allocation5 + $0x288] sm:$0xff] }
 0x1c6   :  { %v830_v51 = vrot.slane %v2095_v22, %v2131_v62  ;;  %v766_v56 = vrot.slane %v2097_v60, %v2140_v29  ;;  %v770_v3 = vrot.slane %v2099_v31, %v2140_v29  ;;  %v774_v19 = vrot.slane %v2095_v22, %v2140_v29  ;;  %v886_v62 = vld [vmem:[#allocation5 + $0x268] sm:$0xff] }
 0x1c7   :  { %v798_v10 = vrot.slane %v2099_v31, %v2143_v9  ;;  %v802_v24 = vrot.slane %v2095_v22, %v2143_v9  ;;  %v790_v30 = vrot.slane %v2087_v20, %v2143_v9 }
 0x1c8   :  { %v701_v49 = vpop.permute.xlu1 %700  ;;  %v729_v61 = vpop.permute.xlu0 %728 }
 0x1c9   :  { %v719_v5 = vmul.f32 %v706_v1, %v701_v49  ;;  %v720_v21 = vmul.f32 %v710_v16, %v701_v49  ;;  %v721_v63 = vmul.f32 %v714_v17, %v701_v49  ;;  %v722_v15 = vmul.f32 %v718_v48, %v701_v49 }
 0x1ca   :  { %v747_v33 = vmul.f32 %v734_v47, %v729_v61  ;;  %v748_v32 = vmul.f32 %v738_v41, %v729_v61  ;;  %v749_v45 = vmul.f32 %v742_v42, %v729_v61  ;;  %v750_v46 = vmul.f32 %v746_v25, %v729_v61 }
 0x1cb   :  { %v723_v58 = vadd.f32 %v719_v5, %v695_v14  ;;  %v724_v23 = vadd.f32 %v720_v21, %v696_v6  ;;  %v725_v38 = vadd.f32 %v721_v63, %v697_v27  ;;  %v726_v18 = vadd.f32 %v722_v15, %v698_v8 }
 0x1cc   :  { %v794_v1 = vrot.slane %v2097_v60, %v2143_v9 }
 0x1cd   :  { %v757_v4 = vpop.permute.xlu1 %756  ;;  %v752_v54 = vadd.f32 %v748_v32, %v724_v23  ;;  %v753_v13 = vadd.f32 %v749_v45, %v725_v38  ;;  %v754_v28 = vadd.f32 %v750_v46, %v726_v18  ;;  %v751_v57 = vadd.f32 %v747_v33, %v723_v58  ;;  %v813_v39 = vpop.permute.xlu0 %812 }
 0x1ce   :  { %v775_v59 = vmul.f32 %v762_v40, %v757_v4  ;;  %v776_v52 = vmul.f32 %v766_v56, %v757_v4  ;;  %v777_v53 = vmul.f32 %v770_v3, %v757_v4  ;;  %v778_v47 = vmul.f32 %v774_v19, %v757_v4 }
 0x1cf   :  { %v831_v14 = vmul.f32 %v818_v2, %v813_v39  ;;  %v832_v60 = vmul.f32 %v822_v7, %v813_v39  ;;  %v833_v61 = vmul.f32 %v826_v43, %v813_v39  ;;  %v834_v5 = vmul.f32 %v830_v51, %v813_v39  ;;  %v1476_v43 = vld [vmem:[%s2615_s3] sm:$0xff]  ;;  %s1598_s3 = smov [#allocation8]  }
 0x1d0   :  { %v779_v41 = vadd.f32 %v775_v59, %v751_v57  ;;  %v780_v16 = vadd.f32 %v776_v52, %v752_v54  ;;  %v781_v17 = vadd.f32 %v777_v53, %v753_v13  ;;  %v782_v40 = vadd.f32 %v778_v47, %v754_v28  ;;  %s1416_s12 = sshll.u32 %s1598_s3, 4  ;;  %s1417_s12 = int_to_ptr.vmem [resolvable:$true] %s1416_s12 }
 0x1d1   :  { %s1547_s13 = scalar_lea.vmem %s1417_s12, 512  ;;  %p1552_p11 = scmp.lt.s32.totalorder %s1417_s12, %s1417_s12 }
 0x1d2   :  { %v785_v48 = vpop.permute.xlu1 %784  ;;  %v2280_v4 = vpop.permute.xlu0 %1172  ;;  %p1548_p10 = scmp.ne.s32.totalorder %s1417_s12, %s1547_s13  ;;  %p1553_p12 = scmp.lt.s32.totalorder %s1547_s13, %s1547_s13 }
 0x1d3   :  { %v803_v49 = vmul.f32 %v790_v30, %v785_v48  ;;  %v804_v6 = vmul.f32 %v794_v1, %v785_v48  ;;  %v805_v27 = vmul.f32 %v798_v10, %v785_v48  ;;  %v806_v8 = vmul.f32 %v802_v24, %v785_v48  ;;  %2630 = vst [vmem:[#allocation16_spill] sm:$0xff] %v2280_v4  ;;  %v885_v48 = vld [vmem:[#allocation5 + $0x260] sm:$0xff]  ;;  %v938_v4 = vld [vmem:[#allocation5 + $0x2b8] sm:$0xff] }
 0x1d4   :  { %p1554_p13 = por %p1553_p12, %p1552_p11 }
 0x1d5   :  { %v807_v31 = vadd.f32 %v803_v49, %v779_v41  ;;  %v808_v21 = vadd.f32 %v804_v6, %v780_v16  ;;  %v809_v63 = vadd.f32 %v805_v27, %v781_v17  ;;  %v810_v22 = vadd.f32 %v806_v8, %v782_v40  ;;  %v948_v16 = vld [vmem:[#allocation5 + $0x2c0] sm:$0xff]  ;;  %v951_v6 = vld [vmem:[#allocation5 + $0x2d8] sm:$0xff]  ;;  %v949_v27 = vld [vmem:[#allocation5 + $0x2c8] sm:$0xff] }
 0x1d6   :  { %v2304_v17 = vld [vmem:[#allocation2] sm:$0xff]  ;;  %v2310_v8 = vld [vmem:[#allocation2 + $0x8] sm:$0xff]  ;;  %p1555_p0 = pnand %p1554_p13, %p1548_p10 }
 0x1d7   :  { %v836_v15 = vadd.f32 %v832_v60, %v808_v21  ;;  %v837_v42 = vadd.f32 %v833_v61, %v809_v63  ;;  %v838_v20 = vadd.f32 %v834_v5, %v810_v22  ;;  %v841_v25 = vpop.permute.xlu1 %840  ;;  %v835_v58 = vadd.f32 %v831_v14, %v807_v31  ;;  %v2284_v51 = vpop.permute.xlu0 %1088  ;;  %v2314_v60 = vld [vmem:[#allocation2 + $0x10] sm:$0xff]  ;;  %v2318_v31 = vld [vmem:[#allocation2 + $0x18] sm:$0xff]  ;;  %v864_v63 = vld [vmem:[#allocation5 + $0x240] sm:$0xff] }
 0x1d8   :  { %v1293_v40 = vrot.slane %v2304_v17, %v1882_v37  ;;  %v1297_v14 = vrot.slane %v2310_v8, %v1882_v37  ;;  %v1301_v61 = vrot.slane %v2314_v60, %v1882_v37  ;;  %v950_v5 = vld [vmem:[#allocation5 + $0x2d0] sm:$0xff]  ;;  %v1305_v21 = vrot.slane %v2318_v31, %v1882_v37 }
 0x1d9   :  { %v843_v23 = vadd.f32 %v841_v25, %v835_v58  ;;  %v844_v38 = vadd.f32 %v841_v25, %v836_v15  ;;  %v845_v18 = vadd.f32 %v841_v25, %v837_v42  ;;  %v846_v33 = vadd.f32 %v841_v25, %v838_v20  ;;  %v888_v15 = vld [vmem:[#allocation5 + $0x278] sm:$0xff] }
 0x1db   :  { %v2189_v32 = vmax.f32 %v843_v23, 0.0  ;;  %v2191_v45 = vmax.f32 %v844_v38, 0.0  ;;  %v2197_v2 = vmax.f32 %v845_v18, 0.0  ;;  %v2199_v7 = vmax.f32 %v846_v33, 0.0  ;;  %v910_v38 = vld [vmem:[#allocation5 + $0x280] sm:$0xff] }
 0x1dd   :  { %853 = vrot.lane.b32.xlu0 %v2191_v45, %s1584_s27  ;;  %851 = vrot.lane.b32.xlu1 %v2189_v32, %s1584_s27  ;;  %v2327_v20 = vmul.f32 %v948_v16, %v2189_v32  ;;  %v2337_v33 = vmul.f32 %v951_v6, %v2199_v7  ;;  %v913_v6 = vld [vmem:[#allocation5 + $0x298] sm:$0xff] }
 0x1e1   :  { %857 = vrot.lane.b32.xlu0 %v2199_v7, %s1584_s27  ;;  %855 = vrot.lane.b32.xlu1 %v2197_v2, %s1584_s27 }
 0x1e5   :  { %874 = vrot.lane.b32.xlu0 %v2191_v45, %s1585_s2  ;;  %872 = vrot.lane.b32.xlu1 %v2189_v32, %s1585_s2 }
 0x1e9   :  { %878 = vrot.lane.b32.xlu0 %v2199_v7, %s1585_s2  ;;  %876 = vrot.lane.b32.xlu1 %v2197_v2, %s1585_s2 }
 0x1ed   :  { %899 = vrot.lane.b32.xlu0 %v2191_v45, %s1586_s28  ;;  %897 = vrot.lane.b32.xlu1 %v2189_v32, %s1586_s28 }
 0x1f1   :  { %903 = vrot.lane.b32.xlu0 %v2199_v7, %s1586_s28  ;;  %901 = vrot.lane.b32.xlu1 %v2197_v2, %s1586_s28 }
 0x1f5   :  { %924 = vrot.lane.b32.xlu0 %v2191_v45, %s1587_s29  ;;  %922 = vrot.lane.b32.xlu1 %v2189_v32, %s1587_s29 }
 0x1f9   :  { %928 = vrot.lane.b32.xlu0 %v2199_v7, %s1587_s29  ;;  %926 = vrot.lane.b32.xlu1 %v2197_v2, %s1587_s29 }
 0x1fd   :  { %962 = vrot.lane.b32.xlu0 %v2191_v45, %s1588_s30  ;;  %960 = vrot.lane.b32.xlu1 %v2189_v32, %s1588_s30 }
 0x201   :  { %966 = vrot.lane.b32.xlu0 %v2199_v7, %s1588_s30  ;;  %964 = vrot.lane.b32.xlu1 %v2197_v2, %s1588_s30 }
 0x205   :  { %987 = vrot.lane.b32.xlu0 %v2191_v45, %s1589_s5  ;;  %985 = vrot.lane.b32.xlu1 %v2189_v32, %s1589_s5 }
 0x209   :  { %991 = vrot.lane.b32.xlu0 %v2199_v7, %s1589_s5  ;;  %989 = vrot.lane.b32.xlu1 %v2197_v2, %s1589_s5 }
 0x20d   :  { %1012 = vrot.lane.b32.xlu0 %v2191_v45, %s1590_s6  ;;  %1010 = vrot.lane.b32.xlu1 %v2189_v32, %s1590_s6 }
 0x211   :  { %1016 = vrot.lane.b32.xlu0 %v2199_v7, %s1590_s6  ;;  %1014 = vrot.lane.b32.xlu1 %v2197_v2, %s1590_s6 }
 0x215   :  { %1037 = vrot.lane.b32.xlu0 %v2191_v45, %s1591_s7  ;;  %1035 = vrot.lane.b32.xlu1 %v2189_v32, %s1591_s7  ;;  %v867_v32 = vld [vmem:[#allocation5 + $0x258] sm:$0xff] }
 0x219   :  { %1041 = vrot.lane.b32.xlu0 %v2199_v7, %s1591_s7  ;;  %1039 = vrot.lane.b32.xlu1 %v2197_v2, %s1591_s7 }
 0x21d   :  { %1311 = vperm.xlu0 %1467, %v1999_v0   ;;  %1228 = vperm.xlu1 %1470, %v1983_v55  }
 0x221   :  { %1472 = vset.pattern.permute.xlu0 %v1595_v50  ;;  %1471 = vset.pattern.permute.xlu1 %v1592_v11  ;;  %v2274_v50 = vpop.permute.xlu1 %1064 }
 0x222   :  { %1256 = vperm.xlu0 %1472, %v1983_v55   ;;  %1339 = vperm.xlu1 %1471, %v1999_v0  }
 0x225   :  { %v2276_v46 = vpop.permute.xlu1 %1116 }
 0x226   :  { %1473 = vset.pattern.permute.xlu1 %v1593_v12  ;;  %1475 = vset.pattern.permute.xlu0 %v1592_v11 }
 0x227   :  { %1367 = vperm.xlu1 %1473, %v1999_v0  }
 0x229   :  { %v2278_v55 = vpop.permute.xlu1 %1144 }
 0x22a   :  { %2629 = vst [vmem:[#allocation15_spill] sm:$0xff] %v2278_v55 }
 0x22b   :  { %1474 = vset.pattern.permute.xlu1 %v1592_v11 }
 0x22c   :  { %1399 = vperm.xlu1 %1474, %v1476_v43   ;;  %v2340_v43 = vmul.f32 %v949_v27, %v2191_v45 }
 0x22d   :  { %v2282_v12 = vpop.permute.xlu1 %1200 }
 0x22e   :  { %2631 = vst [vmem:[#allocation17_spill] sm:$0xff] %v2282_v12 }
 0x231   :  { %v2286_v0 = vpop.permute.xlu1 %1287 }
 0x24f   :  { %v854_v11 = vpop.permute.xlu0 %853  ;;  %v852_v56 = vpop.permute.xlu1 %851 }
 0x253   :  { %v858_v3 = vpop.permute.xlu0 %857  ;;  %v856_v19 = vpop.permute.xlu1 %855 }
 0x254   :  { %v862_v22 = vsel %vm75_vm0, %v858_v3, %v852_v56  ;;  %v859_v16 = vsel %vm75_vm0, %v856_v19, %v858_v3  ;;  %v865_v3 = vld [vmem:[#allocation5 + $0x248] sm:$0xff] }
 0x255   :  { %v868_v12 = vmul.f32 %v864_v63, %v862_v22 }
 0x257   :  { %v875_v54 = vpop.permute.xlu0 %874  ;;  %v873_v13 = vpop.permute.xlu1 %872 }
 0x25b   :  { %v879_v28 = vpop.permute.xlu0 %878  ;;  %v877_v57 = vpop.permute.xlu1 %876 }
 0x25c   :  { %v883_v49 = vsel %vm96_vm1, %v879_v28, %v873_v13  ;;  %v880_v42 = vsel %vm96_vm1, %v877_v57, %v879_v28  ;;  %v2343_v28 = vmul.f32 %v1293_v40, %v2286_v0  ;;  %v935_v40 = vld [vmem:[#allocation5 + $0x2a0] sm:$0xff] }
 0x25d   :  { %v889_v23 = vmul.f32 %v885_v48, %v883_v49  ;;  %v882_v48 = vsel %vm96_vm1, %v873_v13, %v875_v54  ;;  %v2350_v49 = vmul.f32 %v950_v5, %v2197_v2  ;;  %v892_v7 = vmul.f32 %v888_v15, %v880_v42  ;;  %v887_v13 = vld [vmem:[#allocation5 + $0x270] sm:$0xff] }
 0x25e   :  { %2632 = vst [vmem:[#allocation18_spill] sm:$0xff] %v2343_v28  ;;  %v861_v28 = vsel %vm75_vm0, %v852_v56, %v854_v11  ;;  %v860_v2 = vsel %vm75_vm0, %v854_v11, %v856_v19  ;;  %v881_v5 = vsel %vm96_vm1, %v875_v54, %v877_v57  ;;  %v871_v15 = vmul.f32 %v867_v32, %v859_v16  ;;  %v866_v56 = vld [vmem:[#allocation5 + $0x250] sm:$0xff]  ;;  %v936_v32 = vld [vmem:[#allocation5 + $0x2a8] sm:$0xff] }
 0x25f   :  { %v2288_v59 = vpop.permute.xlu0 %899  ;;  %v2290_v52 = vpop.permute.xlu1 %897  ;;  %v890_v42 = vmul.f32 %v886_v62, %v882_v48  ;;  %v893_v29 = vadd.f32 %v889_v23, %v868_v12  ;;  %v912_v19 = vld [vmem:[#allocation5 + $0x290] sm:$0xff]  ;;  %v2378_v57 = vmul.f32 %v1297_v14, %v2286_v0  ;;  %v869_v23 = vmul.f32 %v865_v3, %v861_v28 }
 0x260   :  { %v907_v11 = vsel %vm122_vm2, %v2290_v52, %v2288_v59  ;;  %v937_v16 = vld [vmem:[#allocation5 + $0x2b0] sm:$0xff]  ;;  %v2389_v28 = vmul.f32 %v1301_v61, %v2286_v0  ;;  %v1325_v61 = vrot.slane %v2314_v60, %v1879_v36 }
 0x263   :  { %v904_v53 = vpop.permute.xlu0 %903  ;;  %v2292_v47 = vpop.permute.xlu1 %901 }
 0x264   :  { %v908_v18 = vsel %vm122_vm2, %v904_v53, %v2290_v52  ;;  %v905_v45 = vsel %vm122_vm2, %v2292_v47, %v904_v53  ;;  %v906_v54 = vsel %vm122_vm2, %v2288_v59, %v2292_v47 }
 0x265   :  { %v914_v63 = vmul.f32 %v910_v38, %v908_v18  ;;  %v917_v62 = vmul.f32 %v913_v6, %v905_v45  ;;  %v896_v38 = vadd.f32 %v892_v7, %v871_v15  ;;  %v870_v7 = vmul.f32 %v866_v56, %v860_v2  ;;  %v976_v15 = vld [vmem:[#allocation5 + $0x2f8] sm:$0xff]  ;;  %v998_v56 = vld [vmem:[#allocation5 + $0x300] sm:$0xff] }
 0x266   :  { %v916_v6 = vmul.f32 %v912_v19, %v906_v54  ;;  %v2392_v45 = vmul.f32 %v1305_v21, %v2286_v0  ;;  %v1321_v0 = vrot.slane %v2310_v8, %v1879_v36 }
 0x267   :  { %v2294_v39 = vpop.permute.xlu0 %924  ;;  %v2296_v1 = vpop.permute.xlu1 %922  ;;  %v918_v18 = vadd.f32 %v914_v63, %v893_v29  ;;  %v915_v29 = vmul.f32 %v911_v34, %v907_v11  ;;  %v973_v63 = vld [vmem:[#allocation5 + $0x2e0] sm:$0xff]  ;;  %v1317_v34 = vrot.slane %v2304_v17, %v1879_v36 }
 0x268   :  { %v932_v52 = vsel %vm148_vm3, %v2296_v1, %v2294_v39 }
 0x26b   :  { %v929_v10 = vpop.permute.xlu0 %928  ;;  %v2298_v24 = vpop.permute.xlu1 %926 }
 0x26c   :  { %v933_v27 = vsel %vm148_vm3, %v929_v10, %v2296_v1  ;;  %v930_v55 = vsel %vm148_vm3, %v2298_v24, %v929_v10  ;;  %v891_v10 = vmul.f32 %v887_v13, %v881_v5  ;;  %v931_v59 = vsel %vm148_vm3, %v2294_v39, %v2298_v24 }
 0x26d   :  { %v939_v12 = vmul.f32 %v935_v40, %v933_v27  ;;  %v942_v47 = vmul.f32 %v938_v4, %v930_v55  ;;  %v894_v40 = vadd.f32 %v890_v42, %v869_v23  ;;  %v921_v1 = vadd.f32 %v917_v62, %v896_v38  ;;  %v974_v62 = vld [vmem:[#allocation5 + $0x2e8] sm:$0xff] }
 0x26e   :  { %v895_v3 = vadd.f32 %v891_v10, %v870_v7  ;;  %v940_v13 = vmul.f32 %v936_v32, %v932_v52  ;;  %v941_v5 = vmul.f32 %v937_v16, %v931_v59 }
 0x26f   :  { %v2300_v30 = vpop.permute.xlu0 %962  ;;  %v2302_v41 = vpop.permute.xlu1 %960  ;;  %v943_v27 = vadd.f32 %v939_v12, %v918_v18  ;;  %v946_v4 = vadd.f32 %v942_v47, %v921_v1  ;;  %v919_v21 = vadd.f32 %v915_v29, %v894_v40  ;;  %v975_v12 = vld [vmem:[#allocation5 + $0x2f0] sm:$0xff]  ;;  %v1001_v18 = vld [vmem:[#allocation5 + $0x318] sm:$0xff] }
 0x270   :  { %v970_v55 = vsel %vm187_vm4, %v2302_v41, %v2300_v30  ;;  %v920_v2 = vadd.f32 %v916_v6, %v895_v3  ;;  %v1000_v40 = vld [vmem:[#allocation5 + $0x310] sm:$0xff]  ;;  %v1026_v1 = vld [vmem:[#allocation5 + $0x338] sm:$0xff] }
 0x271   :  { %v956_v19 = vadd.f32 %v2327_v20, %v943_v27  ;;  %v977_v54 = vmul.f32 %v973_v63, %v970_v55  ;;  %v944_v10 = vadd.f32 %v940_v13, %v919_v21  ;;  %v1023_v20 = vld [vmem:[#allocation5 + $0x320] sm:$0xff]  ;;  %v959_v16 = vadd.f32 %v2337_v33, %v946_v4  ;;  %v1025_v21 = vld [vmem:[#allocation5 + $0x330] sm:$0xff] }
 0x272   :  { %v945_v38 = vadd.f32 %v941_v5, %v920_v2  ;;  %v1024_v5 = vld [vmem:[#allocation5 + $0x328] sm:$0xff] }
 0x273   :  { %v2329_v25 = vpop.permute.xlu0 %966  ;;  %v2331_v58 = vpop.permute.xlu1 %964  ;;  %v981_v33 = vadd.f32 %v977_v54, %v956_v19 }
 0x274   :  { %v971_v42 = vsel %vm187_vm4, %v2329_v25, %v2302_v41  ;;  %v968_v23 = vsel %vm187_vm4, %v2331_v58, %v2329_v25  ;;  %v969_v41 = vsel %vm187_vm4, %v2300_v30, %v2331_v58  ;;  %v999_v25 = vld [vmem:[#allocation5 + $0x308] sm:$0xff]  ;;  %v958_v55 = vadd.f32 %v2350_v49, %v945_v38 }
 0x275   :  { %v980_v59 = vmul.f32 %v976_v15, %v971_v42  ;;  %v978_v29 = vmul.f32 %v974_v62, %v969_v41  ;;  %v979_v6 = vmul.f32 %v975_v12, %v968_v23  ;;  %v1049_v38 = vld [vmem:[#allocation5 + $0x348] sm:$0xff] }
 0x277   :  { %v2364_v22 = vpop.permute.xlu0 %987  ;;  %v986_v53 = vpop.permute.xlu1 %985  ;;  %v984_v2 = vadd.f32 %v980_v59, %v959_v16  ;;  %v983_v54 = vadd.f32 %v979_v6, %v958_v55 }
 0x278   :  { %v995_v11 = vsel %vm213_vm5, %v986_v53, %v2364_v22 }
 0x279   :  { %v1002_v47 = vmul.f32 %v998_v56, %v995_v11 }
 0x27b   :  { %v992_v48 = vpop.permute.xlu0 %991  ;;  %v990_v14 = vpop.permute.xlu1 %989  ;;  %v1006_v15 = vadd.f32 %v1002_v47, %v981_v33 }
 0x27c   :  { %v996_v32 = vsel %vm213_vm5, %v992_v48, %v986_v53  ;;  %v994_v7 = vsel %vm213_vm5, %v2364_v22, %v990_v14  ;;  %v993_v53 = vsel %vm213_vm5, %v990_v14, %v992_v48  ;;  %v957_v22 = vadd.f32 %v2340_v43, %v944_v10  ;;  %v1048_v14 = vld [vmem:[#allocation5 + $0x340] sm:$0xff]  ;;  %v1051_v10 = vld [vmem:[#allocation5 + $0x358] sm:$0xff] }
 0x27d   :  { %v1005_v3 = vmul.f32 %v1001_v18, %v996_v32  ;;  %v1003_v4 = vmul.f32 %v999_v25, %v994_v7  ;;  %v1050_v18 = vld [vmem:[#allocation5 + $0x350] sm:$0xff]  ;;  %v1329_v32 = vrot.slane %v2318_v31, %v1879_v36 }
 0x27e   :  { %v982_v19 = vadd.f32 %v978_v29, %v957_v22 }
 0x27f   :  { %v1013_v39 = vpop.permute.xlu0 %1012  ;;  %v1011_v24 = vpop.permute.xlu1 %1010 }
 0x280   :  { %v1020_v52 = vsel %vm239_vm6, %v1011_v24, %v1013_v39  ;;  %v1007_v41 = vadd.f32 %v1003_v4, %v982_v19  ;;  %v1377_v4 = vrot.slane %v2310_v8, %v1888_v44 }
 0x281   :  { %v1027_v13 = vmul.f32 %v1023_v20, %v1020_v52  ;;  %v1345_v20 = vrot.slane %v2304_v17, %v1885_v26  ;;  %v1349_v52 = vrot.slane %v2310_v8, %v1885_v26 }
 0x283   :  { %v1017_v30 = vpop.permute.xlu0 %1016  ;;  %v1015_v58 = vpop.permute.xlu1 %1014  ;;  %v1031_v49 = vadd.f32 %v1027_v13, %v1006_v15 }
 0x284   :  { %v1021_v27 = vsel %vm239_vm6, %v1017_v30, %v1011_v24  ;;  %v1019_v63 = vsel %vm239_vm6, %v1013_v39, %v1015_v58  ;;  %v1018_v48 = vsel %vm239_vm6, %v1015_v58, %v1017_v30  ;;  %v1004_v24 = vmul.f32 %v1000_v40, %v993_v53 }
 0x285   :  { %v1030_v42 = vmul.f32 %v1026_v1, %v1021_v27  ;;  %v1028_v62 = vmul.f32 %v1024_v5, %v1019_v63  ;;  %v1009_v39 = vadd.f32 %v1005_v3, %v984_v2  ;;  %v1029_v12 = vmul.f32 %v1025_v21, %v1018_v48 }
 0x286   :  { %v1008_v16 = vadd.f32 %v1004_v24, %v983_v54  ;;  %v1353_v30 = vrot.slane %v2314_v60, %v1885_v26  ;;  %v1357_v5 = vrot.slane %v2318_v31, %v1885_v26  ;;  %v1373_v63 = vrot.slane %v2304_v17, %v1888_v44 }
 0x287   :  { %v1038_v56 = vpop.permute.xlu0 %1037  ;;  %v1036_v11 = vpop.permute.xlu1 %1035  ;;  %v1034_v59 = vadd.f32 %v1030_v42, %v1009_v39  ;;  %v1032_v58 = vadd.f32 %v1028_v62, %v1007_v41  ;;  %v1385_v2 = vrot.slane %v2318_v31, %v1888_v44 }
 0x288   :  { %v1045_v43 = vsel %vm265_vm7, %v1036_v11, %v1038_v56  ;;  %v1033_v53 = vadd.f32 %v1029_v12, %v1008_v16 }
 0x289   :  { %v1052_v23 = vmul.f32 %v1048_v14, %v1045_v43  ;;  %v1381_v14 = vrot.slane %v2314_v60, %v1888_v44 }
 0x28b   :  { %v2446_v47 = vadd.f32 %v1052_v23, %v1031_v49  ;;  %v1042_v25 = vpop.permute.xlu0 %1041  ;;  %v1040_v7 = vpop.permute.xlu1 %1039 }
 0x28c   :  { %v1046_v29 = vsel %vm265_vm7, %v1042_v25, %v1036_v11  ;;  %v1043_v6 = vsel %vm265_vm7, %v1040_v7, %v1042_v25  ;;  %v1044_v40 = vsel %vm265_vm7, %v1038_v56, %v1040_v7 }
 0x28d   :  { %v1055_v1 = vmul.f32 %v1051_v10, %v1046_v29  ;;  %v1053_v27 = vmul.f32 %v1049_v38, %v1044_v40  ;;  %v1054_v33 = vmul.f32 %v1050_v18, %v1043_v6  ;;  %v1070_v3 = vrot.slane %v2446_v47, %v1882_v37 }
 0x28e   :  { %v1094_v13 = vrot.slane %v2446_v47, %v1879_v36  ;;  %v1234_v15 = vrot.slane %v2446_v47, %v2143_v9  ;;  %v1122_v42 = vrot.slane %v2446_v47, %v1885_v26  ;;  %v1150_v56 = vrot.slane %v2446_v47, %v1888_v44 }
 0x28f   :  { %v2464_v22 = vadd.f32 %v1055_v1, %v1034_v59  ;;  %v2466_v35 = vadd.f32 %v1053_v27, %v1032_v58  ;;  %v2468_v55 = vadd.f32 %v1054_v33, %v1033_v53  ;;  %v1083_v21 = vmul.f32 %v1070_v3, %v2274_v50  ;;  %v2633_v33 = vld [vmem:[#allocation12_spill] sm:$0xff] }
 0x290   :  { %v1107_v48 = vmul.f32 %v1094_v13, %v2284_v51  ;;  %v1135_v59 = vmul.f32 %v1122_v42, %v2276_v46  ;;  %v1178_v3 = vrot.slane %v2446_v47, %v2633_v33 }
 0x291   :  { %v1074_v24 = vrot.slane %v2466_v35, %v1882_v37  ;;  %v1078_v11 = vrot.slane %v2468_v55, %v1882_v37  ;;  %v1082_v19 = vrot.slane %v2464_v22, %v1882_v37  ;;  %v1098_v54 = vrot.slane %v2466_v35, %v1879_v36 }
 0x292   :  { %v1102_v62 = vrot.slane %v2468_v55, %v1879_v36  ;;  %v1106_v39 = vrot.slane %v2464_v22, %v1879_v36  ;;  %v1111_v49 = vadd.f32 %v1107_v48, %v1083_v21  ;;  %v1126_v12 = vrot.slane %v2466_v35, %v1885_v26  ;;  %v2634_v48 = vld [vmem:[#allocation15_spill] sm:$0xff] }
 0x293   :  { %v1084_v43 = vmul.f32 %v1074_v24, %v2274_v50  ;;  %v1085_v23 = vmul.f32 %v1078_v11, %v2274_v50  ;;  %v1086_v41 = vmul.f32 %v1082_v19, %v2274_v50  ;;  %v1108_v37 = vmul.f32 %v1098_v54, %v2284_v51 }
 0x294   :  { %v1109_v10 = vmul.f32 %v1102_v62, %v2284_v51  ;;  %v1110_v38 = vmul.f32 %v1106_v39, %v2284_v51  ;;  %v1130_v18 = vrot.slane %v2468_v55, %v1885_v26  ;;  %v1134_v16 = vrot.slane %v2464_v22, %v1885_v26 }
 0x295   :  { %v1112_v25 = vadd.f32 %v1108_v37, %v1084_v43  ;;  %v1136_v58 = vmul.f32 %v1126_v12, %v2276_v46  ;;  %v1154_v50 = vrot.slane %v2466_v35, %v1888_v44  ;;  %v1158_v40 = vrot.slane %v2468_v55, %v1888_v44 }
 0x296   :  { %v1113_v7 = vadd.f32 %v1109_v10, %v1085_v23  ;;  %v1114_v29 = vadd.f32 %v1110_v38, %v1086_v41  ;;  %v1137_v6 = vmul.f32 %v1130_v18, %v2276_v46  ;;  %v1138_v51 = vmul.f32 %v1134_v16, %v2276_v46  ;;  %v2635_v10 = vld [vmem:[#allocation16_spill] sm:$0xff] }
 0x297   :  { %v1139_v53 = vadd.f32 %v1135_v59, %v1111_v49  ;;  %v1140_v1 = vadd.f32 %v1136_v58, %v1112_v25  ;;  %v1162_v27 = vrot.slane %v2464_v22, %v1888_v44  ;;  %v1163_v24 = vmul.f32 %v1150_v56, %v2634_v48  ;;  %v2636_v25 = vld [vmem:[#allocation14_spill] sm:$0xff] }
 0x298   :  { %v1141_v13 = vadd.f32 %v1137_v6, %v1113_v7  ;;  %v1142_v21 = vadd.f32 %v1138_v51, %v1114_v29  ;;  %v1182_v42 = vrot.slane %v2466_v35, %v2633_v33  ;;  %v1238_v46 = vrot.slane %v2466_v35, %v2143_v9 }
 0x299   :  { %v1164_v11 = vmul.f32 %v1154_v50, %v2634_v48  ;;  %v1165_v19 = vmul.f32 %v1158_v40, %v2634_v48  ;;  %v1186_v54 = vrot.slane %v2468_v55, %v2633_v33  ;;  %v1242_v62 = vrot.slane %v2468_v55, %v2143_v9 }
 0x29a   :  { %v1246_v43 = vrot.slane %v2464_v22, %v2143_v9  ;;  %v1166_v56 = vmul.f32 %v1162_v27, %v2634_v48  ;;  %v1190_v39 = vrot.slane %v2464_v22, %v2633_v33  ;;  %v1167_v23 = vadd.f32 %v1163_v24, %v1139_v53  ;;  %v2637_v48 = vld [vmem:[#allocation18_spill] sm:$0xff]  ;;  %v2638_v24 = vld [vmem:[#allocation17_spill] sm:$0xff] }
 0x29b   :  { %v1168_v41 = vadd.f32 %v1164_v11, %v1140_v1  ;;  %v1169_v37 = vadd.f32 %v1165_v19, %v1141_v13  ;;  %v1191_v38 = vmul.f32 %v1178_v3, %v2635_v10  ;;  %v1192_v16 = vmul.f32 %v1182_v42, %v2635_v10 }
 0x29c   :  { %v1312_v49 = vpop.permute.xlu0 %1311  ;;  %v1229_v12 = vpop.permute.xlu1 %1228  ;;  %v1170_v18 = vadd.f32 %v1166_v56, %v1142_v21  ;;  %v1193_v59 = vmul.f32 %v1186_v54, %v2635_v10  ;;  %v1206_v9 = vrot.slane %v2446_v47, %v2636_v25  ;;  %v1210_v29 = vrot.slane %v2466_v35, %v2636_v25  ;;  %v2639_v56 = vld [vmem:[#allocation13_spill] sm:$0xff] }
 0x29d   :  { %v1330_v7 = vmul.f32 %v1317_v34, %v1312_v49  ;;  %v1331_v58 = vmul.f32 %v1321_v0, %v1312_v49  ;;  %v1332_v50 = vmul.f32 %v1325_v61, %v1312_v49  ;;  %v1333_v6 = vmul.f32 %v1329_v32, %v1312_v49 }
 0x29e   :  { %v1247_v51 = vmul.f32 %v1234_v15, %v1229_v12  ;;  %v1248_v40 = vmul.f32 %v1238_v46, %v1229_v12  ;;  %v1194_v53 = vmul.f32 %v1190_v39, %v2635_v10  ;;  %v1249_v34 = vmul.f32 %v1242_v62, %v1229_v12 }
 0x29f   :  { %v1250_v1 = vmul.f32 %v1246_v43, %v1229_v12  ;;  %v1195_v27 = vadd.f32 %v1191_v38, %v1167_v23  ;;  %v1196_v33 = vadd.f32 %v1192_v16, %v1168_v41  ;;  %v1197_v0 = vadd.f32 %v1193_v59, %v1169_v37 }
 0x2a0   :  { %v1198_v3 = vadd.f32 %v1194_v53, %v1170_v18  ;;  %v1214_v61 = vrot.slane %v2468_v55, %v2636_v25  ;;  %v1218_v13 = vrot.slane %v2464_v22, %v2636_v25  ;;  %v1334_v36 = vadd.f32 %v1330_v7, %v2637_v48 }
 0x2a1   :  { %v1340_v21 = vpop.permute.xlu1 %1339  ;;  %v1335_v32 = vadd.f32 %v1331_v58, %v2378_v57  ;;  %v1336_v15 = vadd.f32 %v1332_v50, %v2389_v28  ;;  %v1220_v42 = vmul.f32 %v1210_v29, %v2638_v24  ;;  %v1337_v46 = vadd.f32 %v1333_v6, %v2392_v45  ;;  %v1257_v62 = vpop.permute.xlu0 %1256 }
 0x2a2   :  { %v1219_v11 = vmul.f32 %v1206_v9, %v2638_v24  ;;  %v1221_v19 = vmul.f32 %v1214_v61, %v2638_v24  ;;  %v1222_v54 = vmul.f32 %v1218_v13, %v2638_v24  ;;  %v1262_v39 = vrot.slane %v2446_v47, %v2639_v56 }
 0x2a3   :  { %v1224_v43 = vadd.f32 %v1220_v42, %v1196_v33  ;;  %v1266_v57 = vrot.slane %v2466_v35, %v2639_v56  ;;  %v1270_v28 = vrot.slane %v2468_v55, %v2639_v56  ;;  %v1274_v23 = vrot.slane %v2464_v22, %v2639_v56 }
 0x2a4   :  { %v1223_v49 = vadd.f32 %v1219_v11, %v1195_v27  ;;  %v1225_v12 = vadd.f32 %v1221_v19, %v1197_v0  ;;  %v1226_v45 = vadd.f32 %v1222_v54, %v1198_v3  ;;  %v1358_v41 = vmul.f32 %v1345_v20, %v1340_v21 }
 0x2a5   :  { %v1359_v47 = vmul.f32 %v1349_v52, %v1340_v21  ;;  %v1360_v35 = vmul.f32 %v1353_v30, %v1340_v21  ;;  %v1361_v55 = vmul.f32 %v1357_v5, %v1340_v21  ;;  %v1275_v10 = vmul.f32 %v1262_v39, %v1257_v62 }
 0x2a6   :  { %v1368_v37 = vpop.permute.xlu1 %1367  ;;  %v1276_v38 = vmul.f32 %v1266_v57, %v1257_v62  ;;  %v1277_v22 = vmul.f32 %v1270_v28, %v1257_v62  ;;  %v1278_v18 = vmul.f32 %v1274_v23, %v1257_v62  ;;  %v1251_v16 = vadd.f32 %v1247_v51, %v1223_v49 }
 0x2a7   :  { %v1252_v59 = vadd.f32 %v1248_v40, %v1224_v43  ;;  %v1253_v20 = vadd.f32 %v1249_v34, %v1225_v12  ;;  %v1254_v25 = vadd.f32 %v1250_v1, %v1226_v45  ;;  %v1362_v9 = vadd.f32 %v1358_v41, %v1334_v36 }
 0x2a8   :  { %v1363_v7 = vadd.f32 %v1359_v47, %v1335_v32  ;;  %v1386_v52 = vmul.f32 %v1373_v63, %v1368_v37  ;;  %v1387_v26 = vmul.f32 %v1377_v4, %v1368_v37  ;;  %v1364_v30 = vadd.f32 %v1360_v35, %v1336_v15 }
 0x2a9   :  { %v1365_v5 = vadd.f32 %v1361_v55, %v1337_v46  ;;  %v1388_v58 = vmul.f32 %v1381_v14, %v1368_v37  ;;  %v1389_v50 = vmul.f32 %v1385_v2, %v1368_v37  ;;  %v1279_v29 = vadd.f32 %v1275_v10, %v1251_v16 }
 0x2aa   :  { %v1280_v6 = vadd.f32 %v1276_v38, %v1252_v59  ;;  %v1390_v51 = vadd.f32 %v1386_v52, %v1362_v9  ;;  %v1391_v40 = vadd.f32 %v1387_v26, %v1363_v7  ;;  %v1281_v17 = vadd.f32 %v1277_v22, %v1253_v20 }
 0x2ab   :  { %v1282_v63 = vadd.f32 %v1278_v18, %v1254_v25  ;;  %v1392_v53 = vadd.f32 %v1388_v58, %v1364_v30  ;;  %v1393_v34 = vadd.f32 %v1389_v50, %v1365_v5  ;;  %v1400_v8 = vpop.permute.xlu1 %1399 }
 0x2ac   :  { %v1395_v4 = vadd.f32 %v1391_v40, %v1280_v6  ;;  %v1394_v1 = vadd.f32 %v1390_v51, %v1279_v29 }
 0x2ad   :  { %v1396_v27 = vadd.f32 %v1392_v53, %v1281_v17  ;;  %v1397_v60 = vadd.f32 %v1393_v34, %v1282_v63 }
 0x2ae   :  { %v1402_v14 = vadd.f32 %v1400_v8, %v1394_v1  ;;  %v1403_v33 = vadd.f32 %v1400_v8, %v1395_v4 }
 0x2af   :  { %v1404_v0 = vadd.f32 %v1400_v8, %v1396_v27  ;;  %v1405_v44 = vadd.f32 %v1400_v8, %v1397_v60 }
 0x2b0   :  { %1406 = vst [vmem:[#allocation8] sm:$0xff] %v1402_v14  ;;  %1407 = vst [vmem:[#allocation8 + $0x8] sm:$0xff] %v1403_v33 }
 0x2b1   :  { %1408 = vst [vmem:[#allocation8 + $0x10] sm:$0xff] %v1404_v0  ;;  %1409 = vst [vmem:[#allocation8 + $0x18] sm:$0xff] %v1405_v44 }
 0x2b2   :  { %1558 = shalt.err (!%p1555_p0)
}
 0x2b3   :  { %s1559_s15 = scalar_lea.hbm %s2616_s4, 512 }
 0x2b4   :  { %p1560_p1 = scmp.ne.s32.totalorder %s2616_s4, %s1559_s15  ;;  %p1563_p2 = scmp.lt.u32.totalorder %s1559_s15, %s2616_s4 }
 0x2b6   :  { %p1565_p3 = pnand %p1563_p2, %p1560_p1 }
 0x2b8   :  { %1568 = shalt.err (!%p1565_p3)
}
 0x2b9   :  { %1419 = dma.vmem_to_hbm [thread:$0]  %s1417_s12, 512, %s2616_s4, [#allocation4]  }
 0x2ba   :  { %1573 = dma.done.wait [#allocation4], 512  }
 0x2bb   :  { %1574 = vsyncadd [#allocation4], 4294966784 }
 0x2bc   :  { %1423 = vsyncpa [#allocation3], 1 }
 0x2bd   :  { %1424 = vsyncpa [#allocation6], 1 }
 0x2be   :  { %1425 = vsyncpa [#allocation4], 1 }

</bundles_post_ra>
